<compile_context>
chip_gen: v7x
topology: tpu7x:2x2x1
jax: 0.10.0
libtpu: 0.0.40
codegen_flags: <defaults>
</compile_context>

<pallas_src>
import math
from functools import partial

import jax
import jax.numpy as jnp
from jax import lax
from jax.experimental import pallas as pl
from jax.experimental.pallas import tpu as pltpu


# Activation sequence after the L3*L4 fusion (fixed by the architecture).
_ACTS_FUSED = ("relu", "relu", "relu", "relu", "sigmoid")


def _round_up(x, m):
    return ((x + m - 1) // m) * m


# ----------------------------------------------------------------------------
# Pure-JAX layer math (PyTorch semantics).  Used ONLY at weight-prep time to
# fold each conv layer into a dense operator, and for the self-check reference.
# ----------------------------------------------------------------------------
def _conv2d_nchw(x, w, *, stride, padding):
    """x: (B, Cin, H, W); w: (Cout, Cin, kh, kw) -- nn.Conv2d, no bias."""
    return lax.conv_general_dilated(
        x, w,
        window_strides=(stride, stride),
        padding=((padding, padding), (padding, padding)),
        dimension_numbers=("NCHW", "OIHW", "NCHW"))


def _conv_transpose2d_nchw(x, w, *, stride, padding, output_padding):
    """x: (B, Cin, H, W); w: (Cin, Cout, kh, kw) -- nn.ConvTranspose2d, no bias."""
    kh, kw = w.shape[2], w.shape[3]
    w_conv = jnp.transpose(jnp.flip(w, (2, 3)), (1, 0, 2, 3))  # (Cout,Cin,kh,kw)
    pad_h = (kh - 1 - padding, kh - 1 - padding + output_padding)
    pad_w = (kw - 1 - padding, kw - 1 - padding + output_padding)
    return lax.conv_general_dilated(
        x, w_conv,
        window_strides=(1, 1),
        padding=(pad_h, pad_w),
        lhs_dilation=(stride, stride),
        dimension_numbers=("NCHW", "OIHW", "NCHW"))


# ----------------------------------------------------------------------------
# Weight preparation: fold every layer into  y = x @ L + b,  fuse the
# activation-free bottleneck pair in f32, pad intermediate widths to multiples
# of 128, cast operators to bf16.  Runs ONCE outside the jitted hot path.
# ----------------------------------------------------------------------------
def prepare_params(params, in_shape=(1, 28, 28), operator_dtype=jnp.bfloat16):
    layer_defs = (
        ("conv",  params["e1_w"], params["e1_b"], dict(stride=2, padding=1), "relu"),
        ("conv",  params["e2_w"], params["e2_b"], dict(stride=2, padding=1), "relu"),
        ("conv",  params["e3_w"], params["e3_b"], dict(stride=1, padding=0), "none"),
        ("convT", params["d1_w"], params["d1_b"],
         dict(stride=1, padding=0, output_padding=0), "relu"),
        ("convT", params["d2_w"], params["d2_b"],
         dict(stride=2, padding=1, output_padding=1), "relu"),
        ("convT", params["d3_w"], params["d3_b"],
         dict(stride=2, padding=1, output_padding=1), "sigmoid"),
    )

    ops_f32, biases_f32, acts = [], [], []
    cur = tuple(in_shape)                       # (C, H, W) flowing through layers
    for kind, w, b, kw, act in layer_defs:
        size = math.prod(cur)
        # Apply the (bias-free, hence linear) layer to the identity basis:
        # row i of L is layer(e_i) flattened, so  flat_x @ L == flatten(layer(x)).
        basis = jnp.eye(size, dtype=jnp.float32).reshape((size,) + cur)
        if kind == "conv":
            out = _conv2d_nchw(basis, w, **kw)
        else:
            out = _conv_transpose2d_nchw(basis, w, **kw)
        out_shape = out.shape[1:]               # (Cout, OH, OW)
        ops_f32.append(out.reshape(size, -1))
        # Bias per flat output index (C-major flatten -> repeat over OH*OW).
        biases_f32.append(jnp.repeat(b.astype(jnp.float32),
                                     math.prod(out_shape[1:])))
        acts.append(act)
        cur = out_shape

    # Algebraic fusion of the activation-free pair (encoder conv3 / decoder
    # convT1):  relu((x @ L3 + b3) @ L4 + b4) == relu(x @ (L3@L4) + (b3@L4 + b4)).
    # Product and folded bias computed in float32 (single bf16 cast later).
    i = acts.index("none")
    L_fused = ops_f32[i] @ ops_f32[i + 1]
    b_fused = biases_f32[i] @ ops_f32[i + 1] + biases_f32[i + 1]
    ops_f32 = ops_f32[:i] + [L_fused] + ops_f32[i + 2:]
    biases_f32 = biases_f32[:i] + [b_fused] + biases_f32[i + 2:]
    acts = acts[:i] + [acts[i + 1]] + acts[i + 2:]

    # Zero-pad operator columns / rows and biases so every intermediate width
    # is a multiple of 128 (392->512, 196->256).  The final 784-wide layer is
    # left unpadded.  Padded columns get zero weight and zero bias, so the
    # ReLU keeps them exactly zero and padded rows contribute nothing.
    n_layers = len(ops_f32)
    ops, biases = [], []
    prev_pad = ops_f32[0].shape[0]              # input width (784), unpadded
    for idx in range(n_layers):
        L = ops_f32[idx]
        b = biases_f32[idx]
        rows, cols = L.shape
        row_pad = prev_pad
        col_pad = cols if idx == n_layers - 1 else _round_up(cols, 128)
        Lp = jnp.zeros((row_pad, col_pad), jnp.float32).at[:rows, :cols].set(L)
        bp = jnp.zeros((col_pad,), jnp.float32).at[:cols].set(b)
        ops.append(Lp.astype(operator_dtype))
        biases.append(bp)
        prev_pad = col_pad

    max_w = max(bb.shape[0] for bb in biases)
    b_stack = jnp.stack([jnp.pad(bb, (0, max_w - bb.shape[0])) for bb in biases])
    return tuple(ops), b_stack, tuple(acts)


# ----------------------------------------------------------------------------
# The fused Pallas kernel: 5 GEMMs + bias + ReLU/sigmoid, all VMEM-resident.
# ----------------------------------------------------------------------------
def _fused_autoencoder_kernel(x_ref, *refs, acts):
    n_layers = len(acts)
    l_refs = refs[:n_layers]
    b_ref = refs[n_layers]
    o_ref = refs[n_layers + 1]

    # Single cast of the input tile to bf16; activations are carried in bf16
    # between layers, accumulation / bias / epilogue stay in float32.
    h = x_ref[...].astype(l_refs[0].dtype)                    # (TM, 784) bf16
    for i, act in enumerate(acts):
        width = l_refs[i].shape[1]
        acc = jnp.dot(h, l_refs[i][...],
                      preferred_element_type=jnp.float32)     # MXU, f32 acc
        acc = acc + b_ref[i:i + 1, 0:width]                   # f32 bias row
        if act == "relu":
            h = jnp.maximum(acc, 0.0).astype(l_refs[i].dtype)  # bf16 carry
        elif act == "sigmoid":
            # Exact sigmoid on the single final 784-wide layer (f32).
            z = jnp.maximum(acc, -88.0)
            h = 1.0 / (1.0 + jnp.exp(-z))
        else:
            h = acc.astype(l_refs[i].dtype)
    o_ref[...] = h.astype(o_ref.dtype)


def autoencoder_cnn_forward(x_nchw, ops, b_stack, *, acts=_ACTS_FUSED, tile_m=256):
    """x_nchw: (N, 1, 28, 28) float32 -> (N, 1, 28, 28) float32."""
    n = x_nchw.shape[0]
    x_flat = x_nchw.reshape(n, -1).astype(jnp.float32)        # (N, 784), C-major
    in_size = x_flat.shape[1]
    out_size = ops[-1].shape[1]

    # Batch tiling: TM rows per grid step (multiple of 8, capped so weights +
    # double-buffered in/out tiles fit the 16 MiB v5e scoped-VMEM default).
    n8 = max(8, _round_up(n, 8))
    tm = min(tile_m, n8)
    n_pad = _round_up(n8, tm)
    if n_pad != n:
        x_flat = jnp.pad(x_flat, ((0, n_pad - n), (0, 0)))

    kernel = partial(_fused_autoencoder_kernel, acts=acts)

    in_specs = [pl.BlockSpec((tm, in_size), lambda i: (i, 0))]
    # Weights / biases: constant index_map -> DMA'd once, VMEM-resident.
    in_specs += [pl.BlockSpec(op.shape, lambda i: (0, 0)) for op in ops]
    in_specs += [pl.BlockSpec(b_stack.shape, lambda i: (0, 0))]

    y_flat = pl.pallas_call(
        kernel,
        out_shape=jax.ShapeDtypeStruct((n_pad, out_size), jnp.float32),
        grid=(n_pad // tm,),
        in_specs=in_specs,
        out_specs=pl.BlockSpec((tm, out_size), lambda i: (i, 0)),
        compiler_params=pltpu.CompilerParams(
            dimension_semantics=("parallel",)),   # v7x: 2 TCs split batch tiles
    )(x_flat, *ops, b_stack)

    return y_flat[:n].reshape(x_nchw.shape)


# ----------------------------------------------------------------------------
# Parameter init (PyTorch default uniform init) and a pure-JAX reference
# forward used only as a self-check of the operator folding / fusion.
# ----------------------------------------------------------------------------
def init_params(key):
    widths = [1, 2, 4, 8]
    keys = jax.random.split(key, 6)

    def conv_init(k, cout, cin, ks):
        bound = 1.0 / math.sqrt(cin * ks * ks)
        kw_, kb_ = jax.random.split(k)
        w = jax.random.uniform(kw_, (cout, cin, ks, ks), jnp.float32, -bound, bound)
        b = jax.random.uniform(kb_, (cout,), jnp.float32, -bound, bound)
        return w, b

    def convT_init(k, cin, cout, ks):
        bound = 1.0 / math.sqrt(cout * ks * ks)
        kw_, kb_ = jax.random.split(k)
        w = jax.random.uniform(kw_, (cin, cout, ks, ks), jnp.float32, -bound, bound)
        b = jax.random.uniform(kb_, (cout,), jnp.float32, -bound, bound)
        return w, b

    p = {}
    p["e1_w"], p["e1_b"] = conv_init(keys[0], widths[1], widths[0], 3)
    p["e2_w"], p["e2_b"] = conv_init(keys[1], widths[2], widths[1], 3)
    p["e3_w"], p["e3_b"] = conv_init(keys[2], widths[3], widths[2], 7)
    p["d1_w"], p["d1_b"] = convT_init(keys[3], widths[3], widths[2], 7)
    p["d2_w"], p["d2_b"] = convT_init(keys[4], widths[2], widths[1], 3)
    p["d3_w"], p["d3_b"] = convT_init(keys[5], widths[1], widths[0], 3)
    return p


def _reference_forward(x, p):
    def badd(h, b):
        return h + b[None, :, None, None]
    h = jnp.maximum(badd(_conv2d_nchw(x, p["e1_w"], stride=2, padding=1), p["e1_b"]), 0.0)
    h = jnp.maximum(badd(_conv2d_nchw(h, p["e2_w"], stride=2, padding=1), p["e2_b"]), 0.0)
    h = badd(_conv2d_nchw(h, p["e3_w"], stride=1, padding=0), p["e3_b"])
    h = jnp.maximum(badd(_conv_transpose2d_nchw(
        h, p["d1_w"], stride=1, padding=0, output_padding=0), p["d1_b"]), 0.0)
    h = jnp.maximum(badd(_conv_transpose2d_nchw(
        h, p["d2_w"], stride=2, padding=1, output_padding=1), p["d2_b"]), 0.0)
    h = badd(_conv_transpose2d_nchw(
        h, p["d3_w"], stride=2, padding=1, output_padding=1), p["d3_b"])
    return jax.nn.sigmoid(h)


# ----------------------------------------------------------------------------
if __name__ == "__main__":
    key = jax.random.PRNGKey(0)
    k_param, k_x = jax.random.split(key)

    params = init_params(k_param)
    ops, b_stack, acts = prepare_params(params)    # one-time weight folding/fusion
    assert acts == _ACTS_FUSED, acts

    # MNIST-like input implied by the 7x7 bottleneck conv: (N=2, C=1, 28, 28)
    x = jax.random.uniform(k_x, (2, 1, 28, 28), jnp.float32)

    fwd = jax.jit(partial(autoencoder_cnn_forward, acts=acts))
    out = jax.block_until_ready(fwd(x, ops, b_stack))

    assert out.shape == (2, 1, 28, 28), out.shape
    assert out.dtype == jnp.float32
    assert bool(jnp.all(jnp.isfinite(out)))
    # sigmoid range
    assert bool(jnp.all((out >= 0.0) & (out <= 1.0)))

    # Self-check of the operator folding + L3*L4 fusion against a pure-JAX
    # reference (loose tolerance covers the bf16 operators / bf16 activations).
    ref = _reference_forward(x, params)
    assert float(jnp.max(jnp.abs(out - ref))) < 5e-2

    print("KERNEL_OK")
</pallas_src>

<mosaic_0001>
module attributes {stable_mosaic.version = 11 : i64} {
  func.func @_fused_autoencoder_kernel(%arg0: i32, %arg1: memref<8x784xf32, #tpu.memory_space<vmem>>, %arg2: memref<784x512xbf16, #tpu.memory_space<vmem>>, %arg3: memref<512x256xbf16, #tpu.memory_space<vmem>>, %arg4: memref<256x256xbf16, #tpu.memory_space<vmem>>, %arg5: memref<256x512xbf16, #tpu.memory_space<vmem>>, %arg6: memref<512x784xbf16, #tpu.memory_space<vmem>>, %arg7: memref<5x784xf32, #tpu.memory_space<vmem>>, %arg8: memref<8x784xf32, #tpu.memory_space<vmem>>) attributes {dimension_semantics = [#tpu.dimension_semantics<parallel>], iteration_bounds = array<i64: 1>, scalar_prefetch = 0 : i64, scratch_operands = 0 : i64, tpu.core_type = #tpu.core_type<tc>, window_params = [{transform_indices = @transform_0, window_bounds = array<i64: 8, 784>}, {pipeline_mode = #tpu.pipeline_mode<synchronous>, transform_indices = @transform_1, window_bounds = array<i64: 784, 512>}, {pipeline_mode = #tpu.pipeline_mode<synchronous>, transform_indices = @transform_2, window_bounds = array<i64: 512, 256>}, {pipeline_mode = #tpu.pipeline_mode<synchronous>, transform_indices = @transform_3, window_bounds = array<i64: 256, 256>}, {pipeline_mode = #tpu.pipeline_mode<synchronous>, transform_indices = @transform_4, window_bounds = array<i64: 256, 512>}, {pipeline_mode = #tpu.pipeline_mode<synchronous>, transform_indices = @transform_5, window_bounds = array<i64: 512, 784>}, {pipeline_mode = #tpu.pipeline_mode<synchronous>, transform_indices = @transform_6, window_bounds = array<i64: 5, 784>}, {transform_indices = @transform_7, window_bounds = array<i64: 8, 784>}]} {
    %c0 = arith.constant 0 : index
    %c0_0 = arith.constant 0 : index
    %0 = vector.load %arg1[%c0, %c0_0] : memref<8x784xf32, #tpu.memory_space<vmem>>, vector<8x784xf32>
    %1 = arith.truncf %0 : vector<8x784xf32> to vector<8x784xbf16>
    %c0_1 = arith.constant 0 : index
    %c0_2 = arith.constant 0 : index
    %2 = vector.load %arg2[%c0_1, %c0_2] : memref<784x512xbf16, #tpu.memory_space<vmem>>, vector<784x512xbf16>
    %cst = arith.constant dense<0.000000e+00> : vector<8x512xf32>
    %3 = tpu.matmul %1, %2, %cst {dimension_numbers = #tpu.dot_dimension_numbers<[1], [0], [0], [1], [0, 0, 1, 1], [], []>} : vector<8x784xbf16>, vector<784x512xbf16>, vector<8x512xf32> -> vector<8x512xf32>
    %c0_3 = arith.constant 0 : index
    %c0_4 = arith.constant 0 : index
    %4 = vector.load %arg7[%c0_3, %c0_4] : memref<5x784xf32, #tpu.memory_space<vmem>>, vector<1x512xf32>
    %5 = vector.broadcast %4 : vector<1x512xf32> to vector<8x512xf32>
    %6 = arith.addf %3, %5 : vector<8x512xf32>
    %cst_5 = arith.constant 0.000000e+00 : f32
    %7 = vector.broadcast %cst_5 : f32 to vector<8x512xf32>
    %8 = arith.maximumf %6, %7 : vector<8x512xf32>
    %9 = arith.truncf %8 : vector<8x512xf32> to vector<8x512xbf16>
    %c0_6 = arith.constant 0 : index
    %c0_7 = arith.constant 0 : index
    %10 = vector.load %arg3[%c0_6, %c0_7] : memref<512x256xbf16, #tpu.memory_space<vmem>>, vector<512x256xbf16>
    %cst_8 = arith.constant dense<0.000000e+00> : vector<8x256xf32>
    %11 = tpu.matmul %9, %10, %cst_8 {dimension_numbers = #tpu.dot_dimension_numbers<[1], [0], [0], [1], [0, 0, 1, 1], [], []>} : vector<8x512xbf16>, vector<512x256xbf16>, vector<8x256xf32> -> vector<8x256xf32>
    %c1 = arith.constant 1 : index
    %c0_9 = arith.constant 0 : index
    %12 = vector.load %arg7[%c1, %c0_9] : memref<5x784xf32, #tpu.memory_space<vmem>>, vector<1x256xf32>
    %13 = vector.broadcast %12 : vector<1x256xf32> to vector<8x256xf32>
    %14 = arith.addf %11, %13 : vector<8x256xf32>
    %cst_10 = arith.constant 0.000000e+00 : f32
    %15 = vector.broadcast %cst_10 : f32 to vector<8x256xf32>
    %16 = arith.maximumf %14, %15 : vector<8x256xf32>
    %17 = arith.truncf %16 : vector<8x256xf32> to vector<8x256xbf16>
    %c0_11 = arith.constant 0 : index
    %c0_12 = arith.constant 0 : index
    %18 = vector.load %arg4[%c0_11, %c0_12] : memref<256x256xbf16, #tpu.memory_space<vmem>>, vector<256x256xbf16>
    %cst_13 = arith.constant dense<0.000000e+00> : vector<8x256xf32>
    %19 = tpu.matmul %17, %18, %cst_13 {dimension_numbers = #tpu.dot_dimension_numbers<[1], [0], [0], [1], [0, 0, 1, 1], [], []>} : vector<8x256xbf16>, vector<256x256xbf16>, vector<8x256xf32> -> vector<8x256xf32>
    %c2 = arith.constant 2 : index
    %c0_14 = arith.constant 0 : index
    %20 = vector.load %arg7[%c2, %c0_14] : memref<5x784xf32, #tpu.memory_space<vmem>>, vector<1x256xf32>
    %21 = vector.broadcast %20 : vector<1x256xf32> to vector<8x256xf32>
    %22 = arith.addf %19, %21 : vector<8x256xf32>
    %cst_15 = arith.constant 0.000000e+00 : f32
    %23 = vector.broadcast %cst_15 : f32 to vector<8x256xf32>
    %24 = arith.maximumf %22, %23 : vector<8x256xf32>
    %25 = arith.truncf %24 : vector<8x256xf32> to vector<8x256xbf16>
    %c0_16 = arith.constant 0 : index
    %c0_17 = arith.constant 0 : index
    %26 = vector.load %arg5[%c0_16, %c0_17] : memref<256x512xbf16, #tpu.memory_space<vmem>>, vector<256x512xbf16>
    %cst_18 = arith.constant dense<0.000000e+00> : vector<8x512xf32>
    %27 = tpu.matmul %25, %26, %cst_18 {dimension_numbers = #tpu.dot_dimension_numbers<[1], [0], [0], [1], [0, 0, 1, 1], [], []>} : vector<8x256xbf16>, vector<256x512xbf16>, vector<8x512xf32> -> vector<8x512xf32>
    %c3 = arith.constant 3 : index
    %c0_19 = arith.constant 0 : index
    %28 = vector.load %arg7[%c3, %c0_19] : memref<5x784xf32, #tpu.memory_space<vmem>>, vector<1x512xf32>
    %29 = vector.broadcast %28 : vector<1x512xf32> to vector<8x512xf32>
    %30 = arith.addf %27, %29 : vector<8x512xf32>
    %cst_20 = arith.constant 0.000000e+00 : f32
    %31 = vector.broadcast %cst_20 : f32 to vector<8x512xf32>
    %32 = arith.maximumf %30, %31 : vector<8x512xf32>
    %33 = arith.truncf %32 : vector<8x512xf32> to vector<8x512xbf16>
    %c0_21 = arith.constant 0 : index
    %c0_22 = arith.constant 0 : index
    %34 = vector.load %arg6[%c0_21, %c0_22] : memref<512x784xbf16, #tpu.memory_space<vmem>>, vector<512x784xbf16>
    %cst_23 = arith.constant dense<0.000000e+00> : vector<8x784xf32>
    %35 = tpu.matmul %33, %34, %cst_23 {dimension_numbers = #tpu.dot_dimension_numbers<[1], [0], [0], [1], [0, 0, 1, 1], [], []>} : vector<8x512xbf16>, vector<512x784xbf16>, vector<8x784xf32> -> vector<8x784xf32>
    %c4 = arith.constant 4 : index
    %c0_24 = arith.constant 0 : index
    %36 = vector.load %arg7[%c4, %c0_24] : memref<5x784xf32, #tpu.memory_space<vmem>>, vector<1x784xf32>
    %37 = vector.broadcast %36 : vector<1x784xf32> to vector<8x784xf32>
    %38 = arith.addf %35, %37 : vector<8x784xf32>
    %cst_25 = arith.constant -8.800000e+01 : f32
    %39 = vector.broadcast %cst_25 : f32 to vector<8x784xf32>
    %40 = arith.maximumf %38, %39 : vector<8x784xf32>
    %cst_26 = arith.constant 0.000000e+00 : f32
    %41 = vector.broadcast %cst_26 : f32 to vector<8x784xf32>
    %42 = arith.subf %41, %40 : vector<8x784xf32>
    %43 = math.exp %42 : vector<8x784xf32>
    %cst_27 = arith.constant 1.000000e+00 : f32
    %44 = vector.broadcast %cst_27 : f32 to vector<8x784xf32>
    %45 = arith.addf %44, %43 : vector<8x784xf32>
    %cst_28 = arith.constant 1.000000e+00 : f32
    %46 = vector.broadcast %cst_28 : f32 to vector<8x784xf32>
    %47 = arith.divf %46, %45 : vector<8x784xf32>
    %c0_29 = arith.constant 0 : index
    %c0_30 = arith.constant 0 : index
    %48 = vector.load %arg8[%c0_29, %c0_30] : memref<8x784xf32, #tpu.memory_space<vmem>>, vector<8x784xf32>
    tpu.vector_store %arg8[%c0_29, %c0_30], %47 {strides = array<i32>} : memref<8x784xf32, #tpu.memory_space<vmem>>, vector<8x784xf32>,
    return
  }
  func.func @transform_0(%arg0: i32) -> (i32, i32) {
    %c0_i32 = arith.constant 0 : i32
    %c0_i32_0 = arith.constant 0 : i32
    return %arg0, %c0_i32 : i32, i32
  }
  func.func @transform_1(%arg0: i32) -> (i32, i32) {
    %c0_i32 = arith.constant 0 : i32
    %c0_i32_0 = arith.constant 0 : i32
    %c0_i32_1 = arith.constant 0 : i32
    return %c0_i32, %c0_i32_0 : i32, i32
  }
  func.func @transform_2(%arg0: i32) -> (i32, i32) {
    %c0_i32 = arith.constant 0 : i32
    %c0_i32_0 = arith.constant 0 : i32
    %c0_i32_1 = arith.constant 0 : i32
    return %c0_i32, %c0_i32_0 : i32, i32
  }
  func.func @transform_3(%arg0: i32) -> (i32, i32) {
    %c0_i32 = arith.constant 0 : i32
    %c0_i32_0 = arith.constant 0 : i32
    %c0_i32_1 = arith.constant 0 : i32
    return %c0_i32, %c0_i32_0 : i32, i32
  }
  func.func @transform_4(%arg0: i32) -> (i32, i32) {
    %c0_i32 = arith.constant 0 : i32
    %c0_i32_0 = arith.constant 0 : i32
    %c0_i32_1 = arith.constant 0 : i32
    return %c0_i32, %c0_i32_0 : i32, i32
  }
  func.func @transform_5(%arg0: i32) -> (i32, i32) {
    %c0_i32 = arith.constant 0 : i32
    %c0_i32_0 = arith.constant 0 : i32
    %c0_i32_1 = arith.constant 0 : i32
    return %c0_i32, %c0_i32_0 : i32, i32
  }
  func.func @transform_6(%arg0: i32) -> (i32, i32) {
    %c0_i32 = arith.constant 0 : i32
    %c0_i32_0 = arith.constant 0 : i32
    %c0_i32_1 = arith.constant 0 : i32
    return %c0_i32, %c0_i32_0 : i32, i32
  }
  func.func @transform_7(%arg0: i32) -> (i32, i32) {
    %c0_i32 = arith.constant 0 : i32
    %c0_i32_0 = arith.constant 0 : i32
    return %arg0, %c0_i32 : i32, i32
  }
}

</mosaic_0001>

<bundles_post_ra>
// kernel: autoencoder_cnn_forward.1
= control target key start
LH: loop header
LB: loop body
LE: loop exit
PB: predicated region body
PF: predicated region fallthrough
CT: control target
= control target key end

     0   :  { %vm1239_vm0 = vcmask 130048   ;;  %s8137_s1 = inlined_call_operand.vmem [shape: bf16[784,512], index: 1, kind: input, shape index: {}]   ;;  %s8138_s0 = inlined_call_operand.vmem [shape: f32[8,784], index: 0, kind: input, shape index: {}]   ;;  %s8139_s2 = inlined_call_operand.vmem [shape: bf16[512,256], index: 2, kind: input, shape index: {}]   ;;  %s8140_s3 = inlined_call_operand.vmem [shape: bf16[256,256], index: 3, kind: input, shape index: {}]   ;;  %s8141_s6 = inlined_call_operand.vmem [shape: f32[5,784], index: 6, kind: input, shape index: {}]   ;;  %s8142_s4 = inlined_call_operand.vmem [shape: bf16[256,512], index: 4, kind: input, shape index: {}]   ;;  %s8143_s5 = inlined_call_operand.vmem [shape: bf16[512,784], index: 5, kind: input, shape index: {}]   ;;  %s8144_s7 = inlined_call_operand.vmem [shape: f32[8,784], index: 7, kind: output, shape index: {}]  }
   0x1   :  { %v5327_v0 = vld [vmem:[%s8137_s1 + $0x4] ss:$16 sps:$4 sm:$0xff]   ;;  %v5329_v1 = vld [vmem:[%s8137_s1 + $0xc] ss:$16 sps:$4 sm:$0xff]   ;;  %v5331_v2 = vld [vmem:[%s8137_s1] ss:$16 sps:$4 sm:$0xff]  }
   0x2   :  { %1243 = vmatprep.subr.bf16.mxu0 %v5327_v0  ;;  %v5332_v3 = vld [vmem:[%s8137_s1 + $0x8] ss:$16 sps:$4 sm:$0xff]   ;;  %1407 = vmatprep.subr.bf16.mxu1 %v5329_v1  ;;  %v5333_v4 = vld [vmem:[%s8137_s1 + $0x24] ss:$16 sps:$4 sm:$0xff]   ;;  %v5335_v5 = vld [vmem:[%s8137_s1 + $0x2c] ss:$16 sps:$4 sm:$0xff]  }
   0x3   :  { %1244 = vmatpush1.bf16.msra.mxu0 %v5331_v2  ;;  %1408 = vmatpush1.bf16.msra.mxu1 %v5332_v3  ;;  %v5337_v6 = vld [vmem:[%s8137_s1 + $0x20] ss:$16 sps:$4 sm:$0xff]   ;;  %v5338_v7 = vld [vmem:[%s8137_s1 + $0x28] ss:$16 sps:$4 sm:$0xff]   ;;  %v5339_v8 = vld [vmem:[%s8137_s1 + $0x44] ss:$16 sps:$4 sm:$0xff]  }
   0x4   :  { %1245 = vmatprep.subr.bf16.mxu0 %v5333_v4  ;;  %1409 = vmatprep.subr.bf16.mxu1 %v5335_v5  ;;  %v5341_v9 = vld [vmem:[%s8137_s1 + $0x4c] ss:$16 sps:$4 sm:$0xff]   ;;  %v5343_v10 = vld [vmem:[%s8137_s1 + $0x40] ss:$16 sps:$4 sm:$0xff]   ;;  %v5344_v11 = vld [vmem:[%s8137_s1 + $0x48] ss:$16 sps:$4 sm:$0xff]  }
   0x5   :  { %v5345_v12 = vld [vmem:[%s8137_s1 + $0x64] ss:$16 sps:$4 sm:$0xff]   ;;  %v5347_v13 = vld [vmem:[%s8137_s1 + $0x6c] ss:$16 sps:$4 sm:$0xff]   ;;  %v5349_v14 = vld [vmem:[%s8137_s1 + $0x60] ss:$16 sps:$4 sm:$0xff]  }
   0x6   :  { %v5350_v15 = vld [vmem:[%s8137_s1 + $0x68] ss:$16 sps:$4 sm:$0xff]   ;;  %v5351_v16 = vld [vmem:[%s8137_s1 + $0x84] ss:$16 sps:$4 sm:$0xff]   ;;  %v5353_v17 = vld [vmem:[%s8137_s1 + $0x8c] ss:$16 sps:$4 sm:$0xff]  }
   0x7   :  { %1246 = vmatpush1.bf16.msra.mxu0 %v5337_v6  ;;  %1410 = vmatpush1.bf16.msra.mxu1 %v5338_v7  ;;  %v5355_v18 = vld [vmem:[%s8137_s1 + $0x80] ss:$16 sps:$4 sm:$0xff]   ;;  %v5356_v19 = vld [vmem:[%s8137_s1 + $0x88] ss:$16 sps:$4 sm:$0xff]   ;;  %v5357_v20 = vld [vmem:[%s8137_s1 + $0xa4] ss:$16 sps:$4 sm:$0xff]  }
   0x8   :  { %1247 = vmatprep.subr.bf16.mxu0 %v5339_v8  ;;  %1411 = vmatprep.subr.bf16.mxu1 %v5341_v9  ;;  %v5359_v21 = vld [vmem:[%s8137_s1 + $0xac] ss:$16 sps:$4 sm:$0xff]   ;;  %v5361_v22 = vld [vmem:[%s8137_s1 + $0xa0] ss:$16 sps:$4 sm:$0xff]   ;;  %v5362_v23 = vld [vmem:[%s8137_s1 + $0xa8] ss:$16 sps:$4 sm:$0xff]  }
   0x9   :  { %v5363_v24 = vld [vmem:[%s8137_s1 + $0xc4] ss:$16 sps:$4 sm:$0xff]   ;;  %v5365_v25 = vld [vmem:[%s8137_s1 + $0xcc] ss:$16 sps:$4 sm:$0xff]   ;;  %v5367_v26 = vld [vmem:[%s8137_s1 + $0xc0] ss:$16 sps:$4 sm:$0xff]  }
   0xa   :  { %v5368_v27 = vld [vmem:[%s8137_s1 + $0xc8] ss:$16 sps:$4 sm:$0xff]   ;;  %v5369_v28 = vld [vmem:[%s8137_s1 + $0xe4] ss:$16 sps:$4 sm:$0xff]   ;;  %v5371_v29 = vld [vmem:[%s8137_s1 + $0xec] ss:$16 sps:$4 sm:$0xff]  }
   0xb   :  { %1248 = vmatpush1.bf16.msra.mxu0 %v5343_v10  ;;  %1412 = vmatpush1.bf16.msra.mxu1 %v5344_v11  ;;  %v5373_v30 = vld [vmem:[%s8137_s1 + $0xe0] ss:$16 sps:$4 sm:$0xff]   ;;  %v5374_v31 = vld [vmem:[%s8137_s1 + $0xe8] ss:$16 sps:$4 sm:$0xff]   ;;  %v5375_v32 = vld [vmem:[%s8137_s1 + $0x104] ss:$16 sps:$4 sm:$0xff]  }
   0xc   :  { %1249 = vmatprep.subr.bf16.mxu0 %v5345_v12  ;;  %1413 = vmatprep.subr.bf16.mxu1 %v5347_v13  ;;  %v5377_v33 = vld [vmem:[%s8137_s1 + $0x10c] ss:$16 sps:$4 sm:$0xff]   ;;  %v5379_v34 = vld [vmem:[%s8137_s1 + $0x100] ss:$16 sps:$4 sm:$0xff]   ;;  %v5380_v35 = vld [vmem:[%s8137_s1 + $0x108] ss:$16 sps:$4 sm:$0xff]  }
   0xd   :  { %v5381_v36 = vld [vmem:[%s8137_s1 + $0x124] ss:$16 sps:$4 sm:$0xff]   ;;  %v5383_v37 = vld [vmem:[%s8137_s1 + $0x12c] ss:$16 sps:$4 sm:$0xff]   ;;  %v5385_v38 = vld [vmem:[%s8137_s1 + $0x120] ss:$16 sps:$4 sm:$0xff]  }
   0xe   :  { %v5386_v39 = vld [vmem:[%s8137_s1 + $0x128] ss:$16 sps:$4 sm:$0xff]   ;;  %v5387_v40 = vld [vmem:[%s8137_s1 + $0x144] ss:$16 sps:$4 sm:$0xff]   ;;  %v5389_v41 = vld [vmem:[%s8137_s1 + $0x14c] ss:$16 sps:$4 sm:$0xff]  }
   0xf   :  { %1250 = vmatpush1.bf16.msra.mxu0 %v5349_v14  ;;  %1414 = vmatpush1.bf16.msra.mxu1 %v5350_v15  ;;  %v5391_v42 = vld [vmem:[%s8137_s1 + $0x140] ss:$16 sps:$4 sm:$0xff]   ;;  %v5392_v43 = vld [vmem:[%s8137_s1 + $0x148] ss:$16 sps:$4 sm:$0xff]   ;;  %v5393_v44 = vld [vmem:[%s8137_s1 + $0x164] ss:$16 sps:$4 sm:$0xff]  }
  0x10   :  { %1251 = vmatprep.subr.bf16.mxu0 %v5351_v16  ;;  %1415 = vmatprep.subr.bf16.mxu1 %v5353_v17  ;;  %v5395_v45 = vld [vmem:[%s8137_s1 + $0x16c] ss:$16 sps:$4 sm:$0xff]   ;;  %v5397_v47 = vld [vmem:[%s8137_s1 + $0x160] ss:$16 sps:$4 sm:$0xff]   ;;  %v5398_v49 = vld [vmem:[%s8137_s1 + $0x168] ss:$16 sps:$4 sm:$0xff]  }
  0x11   :  { %v28_v46 = vld [vmem:[%s8138_s0 + $0x8] sm:$0xff]  ;;  %v5399_v50 = vld [vmem:[%s8137_s1 + $0x184] ss:$16 sps:$4 sm:$0xff]   ;;  %v5403_v52 = vld [vmem:[%s8137_s1 + $0x180] ss:$16 sps:$4 sm:$0xff]  }
  0x12   :  { %v35_v48 = vpack.c.bf16 %v28_v46, %v28_v46  ;;  %v5401_v51 = vld [vmem:[%s8137_s1 + $0x18c] ss:$16 sps:$4 sm:$0xff]   ;;  %v5404_v53 = vld [vmem:[%s8137_s1 + $0x188] ss:$16 sps:$4 sm:$0xff]   ;;  %v5405_v54 = vld [vmem:[%s8137_s1 + $0x1a4] ss:$16 sps:$4 sm:$0xff]  }
  0x13   :  { %1252 = vmatpush1.bf16.msra.mxu0 %v5355_v18  ;;  %1416 = vmatpush1.bf16.msra.mxu1 %v5356_v19  ;;  %v5407_v55 = vld [vmem:[%s8137_s1 + $0x1ac] ss:$16 sps:$4 sm:$0xff]   ;;  %v5409_v56 = vld [vmem:[%s8137_s1 + $0x1a0] ss:$16 sps:$4 sm:$0xff]   ;;  %v5410_v57 = vld [vmem:[%s8137_s1 + $0x1a8] ss:$16 sps:$4 sm:$0xff]  }
  0x14   :  { %1253 = vmatprep.subr.bf16.mxu0 %v5357_v20  ;;  %1417 = vmatprep.subr.bf16.mxu1 %v5359_v21  ;;  %v5411_v58 = vld [vmem:[%s8137_s1 + $0x1c4] ss:$16 sps:$4 sm:$0xff]   ;;  %v5413_v59 = vld [vmem:[%s8137_s1 + $0x1cc] ss:$16 sps:$4 sm:$0xff]   ;;  %v5415_v60 = vld [vmem:[%s8137_s1 + $0x1c0] ss:$16 sps:$4 sm:$0xff]  }
  0x15   :  { %1275 = vmatprep.mubr.bf16.mxu0 %v35_v48  ;;  %1439 = vmatprep.mubr.bf16.mxu1 %v35_v48  ;;  %v5416_v61 = vld [vmem:[%s8137_s1 + $0x1c8] ss:$16 sps:$4 sm:$0xff]   ;;  %v5417_v62 = vld [vmem:[%s8137_s1 + $0x1e4] ss:$16 sps:$4 sm:$0xff]   ;;  %v5419_v63 = vld [vmem:[%s8137_s1 + $0x1ec] ss:$16 sps:$4 sm:$0xff]  }
  0x16   :  { %v5421_v0 = vld [vmem:[%s8137_s1 + $0x1e0] ss:$16 sps:$4 sm:$0xff]   ;;  %v5422_v1 = vld [vmem:[%s8137_s1 + $0x1e8] ss:$16 sps:$4 sm:$0xff]   ;;  %v5425_v3 = vld [vmem:[%s8137_s1 + $0x204] ss:$16 sps:$4 sm:$0xff]  }
  0x17   :  { %1254 = vmatpush1.bf16.msra.mxu0 %v5361_v22  ;;  %1418 = vmatpush1.bf16.msra.mxu1 %v5362_v23  ;;  %v27_v2 = vld [vmem:[%s8138_s0] sm:$0xff]  ;;  %v5428_v4 = vld [vmem:[%s8137_s1 + $0x20c] ss:$16 sps:$4 sm:$0xff]   ;;  %v5426_v7 = vld [vmem:[%s8137_s1 + $0x208] ss:$16 sps:$4 sm:$0xff]  }
  0x18   :  { %1255 = vmatprep.subr.bf16.mxu0 %v5363_v24  ;;  %1419 = vmatprep.subr.bf16.mxu1 %v5365_v25  ;;  %v34_v5 = vpack.c.bf16 %v27_v2, %v27_v2  ;;  %v5423_v6 = vld [vmem:[%s8137_s1 + $0x200] ss:$16 sps:$4 sm:$0xff]   ;;  %v5431_v8 = vld [vmem:[%s8137_s1 + $0x224] ss:$16 sps:$4 sm:$0xff]   ;;  %v5434_v9 = vld [vmem:[%s8137_s1 + $0x22c] ss:$16 sps:$4 sm:$0xff]  }
  0x19   :  { %v5429_v10 = vld [vmem:[%s8137_s1 + $0x220] ss:$16 sps:$4 sm:$0xff]   ;;  %v5432_v11 = vld [vmem:[%s8137_s1 + $0x228] ss:$16 sps:$4 sm:$0xff]   ;;  %v5437_v12 = vld [vmem:[%s8137_s1 + $0x244] ss:$16 sps:$4 sm:$0xff]  }
  0x1a   :  { %v5440_v13 = vld [vmem:[%s8137_s1 + $0x24c] ss:$16 sps:$4 sm:$0xff]   ;;  %v5435_v14 = vld [vmem:[%s8137_s1 + $0x240] ss:$16 sps:$4 sm:$0xff]   ;;  %v5438_v15 = vld [vmem:[%s8137_s1 + $0x248] ss:$16 sps:$4 sm:$0xff]  }
  0x1b   :  { %1256 = vmatpush1.bf16.msra.mxu0 %v5367_v26  ;;  %1420 = vmatpush1.bf16.msra.mxu1 %v5368_v27  ;;  %v5443_v16 = vld [vmem:[%s8137_s1 + $0x264] ss:$16 sps:$4 sm:$0xff]   ;;  %v5446_v17 = vld [vmem:[%s8137_s1 + $0x26c] ss:$16 sps:$4 sm:$0xff]   ;;  %v5441_v18 = vld [vmem:[%s8137_s1 + $0x260] ss:$16 sps:$4 sm:$0xff]  }
  0x1c   :  { %1257 = vmatprep.subr.bf16.mxu0 %v5369_v28  ;;  %1421 = vmatprep.subr.bf16.mxu1 %v5371_v29  ;;  %v5444_v19 = vld [vmem:[%s8137_s1 + $0x268] ss:$16 sps:$4 sm:$0xff]   ;;  %v5449_v20 = vld [vmem:[%s8137_s1 + $0x284] ss:$16 sps:$4 sm:$0xff]   ;;  %v5452_v21 = vld [vmem:[%s8137_s1 + $0x28c] ss:$16 sps:$4 sm:$0xff]  }
  0x1d   :  { %v5447_v22 = vld [vmem:[%s8137_s1 + $0x280] ss:$16 sps:$4 sm:$0xff]   ;;  %v5450_v23 = vld [vmem:[%s8137_s1 + $0x288] ss:$16 sps:$4 sm:$0xff]   ;;  %v5455_v24 = vld [vmem:[%s8137_s1 + $0x2a4] ss:$16 sps:$4 sm:$0xff]  }
  0x1e   :  { %v5458_v25 = vld [vmem:[%s8137_s1 + $0x2ac] ss:$16 sps:$4 sm:$0xff]   ;;  %v5453_v26 = vld [vmem:[%s8137_s1 + $0x2a0] ss:$16 sps:$4 sm:$0xff]   ;;  %v5456_v27 = vld [vmem:[%s8137_s1 + $0x2a8] ss:$16 sps:$4 sm:$0xff]  }
  0x1f   :  { %1258 = vmatpush1.bf16.msra.mxu0 %v5373_v30  ;;  %1422 = vmatpush1.bf16.msra.mxu1 %v5374_v31  ;;  %v5461_v28 = vld [vmem:[%s8137_s1 + $0x2c4] ss:$16 sps:$4 sm:$0xff]   ;;  %v5464_v29 = vld [vmem:[%s8137_s1 + $0x2cc] ss:$16 sps:$4 sm:$0xff]   ;;  %v5459_v31 = vld [vmem:[%s8137_s1 + $0x2c0] ss:$16 sps:$4 sm:$0xff]  }
  0x20   :  { %1259 = vmatprep.subr.bf16.mxu0 %v5375_v32  ;;  %1423 = vmatprep.subr.bf16.mxu1 %v5377_v33  ;;  %v30_v30 = vld [vmem:[%s8138_s0 + $0x18] sm:$0xff]  ;;  %v5485_v46 = vld [vmem:[%s8137_s1 + $0x344] ss:$16 sps:$4 sm:$0xff]   ;;  %v5483_v48 = vld [vmem:[%s8137_s1 + $0x340] ss:$16 sps:$4 sm:$0xff]  }
  0x21   :  { %v37_v32 = vpack.c.bf16 %v30_v30, %v30_v30  ;;  %v5462_v33 = vld [vmem:[%s8137_s1 + $0x2c8] ss:$16 sps:$4 sm:$0xff]   ;;  %v5515_v2 = vld [vmem:[%s8137_s1 + $0x3e4] ss:$16 sps:$4 sm:$0xff]  }
  0x22   :  { %v5551_v30 = vld [vmem:[%s8137_s1 + $0x4a4] ss:$16 sps:$4 sm:$0xff]  }
  0x23   :  { %1260 = vmatpush1.bf16.msra.mxu0 %v5379_v34  ;;  %1424 = vmatpush1.bf16.msra.mxu1 %v5380_v35  ;;  %v5467_v34 = vld [vmem:[%s8137_s1 + $0x2e4] ss:$16 sps:$4 sm:$0xff]   ;;  %v5470_v35 = vld [vmem:[%s8137_s1 + $0x2ec] ss:$16 sps:$4 sm:$0xff]  }
  0x24   :  { %1261 = vmatprep.subr.bf16.mxu0 %v5381_v36  ;;  %1425 = vmatprep.subr.bf16.mxu1 %v5383_v37  ;;  %v5465_v36 = vld [vmem:[%s8137_s1 + $0x2e0] ss:$16 sps:$4 sm:$0xff]   ;;  %v5468_v37 = vld [vmem:[%s8137_s1 + $0x2e8] ss:$16 sps:$4 sm:$0xff]  }
  0x27   :  { %1262 = vmatpush1.bf16.msra.mxu0 %v5385_v38  ;;  %1426 = vmatpush1.bf16.msra.mxu1 %v5386_v39  ;;  %v5473_v38 = vld [vmem:[%s8137_s1 + $0x304] ss:$16 sps:$4 sm:$0xff]   ;;  %v5476_v39 = vld [vmem:[%s8137_s1 + $0x30c] ss:$16 sps:$4 sm:$0xff]  }
  0x28   :  { %1263 = vmatprep.subr.bf16.mxu0 %v5387_v40  ;;  %1427 = vmatprep.subr.bf16.mxu1 %v5389_v41  ;;  %v5471_v40 = vld [vmem:[%s8137_s1 + $0x300] ss:$16 sps:$4 sm:$0xff]   ;;  %v5474_v41 = vld [vmem:[%s8137_s1 + $0x308] ss:$16 sps:$4 sm:$0xff]  }
  0x2b   :  { %1264 = vmatpush1.bf16.msra.mxu0 %v5391_v42  ;;  %1428 = vmatpush1.bf16.msra.mxu1 %v5392_v43  ;;  %v5479_v42 = vld [vmem:[%s8137_s1 + $0x324] ss:$16 sps:$4 sm:$0xff]   ;;  %v5482_v43 = vld [vmem:[%s8137_s1 + $0x32c] ss:$16 sps:$4 sm:$0xff]  }
  0x2c   :  { %1265 = vmatprep.subr.bf16.mxu0 %v5393_v44  ;;  %1429 = vmatprep.subr.bf16.mxu1 %v5395_v45  ;;  %v5477_v44 = vld [vmem:[%s8137_s1 + $0x320] ss:$16 sps:$4 sm:$0xff]   ;;  %v5480_v45 = vld [vmem:[%s8137_s1 + $0x328] ss:$16 sps:$4 sm:$0xff]  }
  0x2f   :  { %1266 = vmatpush1.bf16.msra.mxu0 %v5397_v47  ;;  %1430 = vmatpush1.bf16.msra.mxu1 %v5398_v49  ;;  %v5488_v47 = vld [vmem:[%s8137_s1 + $0x34c] ss:$16 sps:$4 sm:$0xff]   ;;  %v5486_v49 = vld [vmem:[%s8137_s1 + $0x348] ss:$16 sps:$4 sm:$0xff]  }
  0x30   :  { %1267 = vmatprep.subr.bf16.mxu0 %v5399_v50  ;;  %1431 = vmatprep.subr.bf16.mxu1 %v5401_v51  ;;  %v5491_v50 = vld [vmem:[%s8137_s1 + $0x364] ss:$16 sps:$4 sm:$0xff]   ;;  %v5494_v51 = vld [vmem:[%s8137_s1 + $0x36c] ss:$16 sps:$4 sm:$0xff]  }
  0x33   :  { %1268 = vmatpush1.bf16.msra.mxu0 %v5403_v52  ;;  %1432 = vmatpush1.bf16.msra.mxu1 %v5404_v53  ;;  %v5489_v52 = vld [vmem:[%s8137_s1 + $0x360] ss:$16 sps:$4 sm:$0xff]   ;;  %v5492_v53 = vld [vmem:[%s8137_s1 + $0x368] ss:$16 sps:$4 sm:$0xff]  }
  0x34   :  { %1269 = vmatprep.subr.bf16.mxu0 %v5405_v54  ;;  %1433 = vmatprep.subr.bf16.mxu1 %v5407_v55  ;;  %v5497_v54 = vld [vmem:[%s8137_s1 + $0x384] ss:$16 sps:$4 sm:$0xff]   ;;  %v5500_v55 = vld [vmem:[%s8137_s1 + $0x38c] ss:$16 sps:$4 sm:$0xff]  }
  0x37   :  { %1270 = vmatpush1.bf16.msra.mxu0 %v5409_v56  ;;  %1434 = vmatpush1.bf16.msra.mxu1 %v5410_v57  ;;  %v5495_v56 = vld [vmem:[%s8137_s1 + $0x380] ss:$16 sps:$4 sm:$0xff]   ;;  %v5498_v57 = vld [vmem:[%s8137_s1 + $0x388] ss:$16 sps:$4 sm:$0xff]  }
  0x38   :  { %1271 = vmatprep.subr.bf16.mxu0 %v5411_v58  ;;  %1435 = vmatprep.subr.bf16.mxu1 %v5413_v59  ;;  %v5503_v58 = vld [vmem:[%s8137_s1 + $0x3a4] ss:$16 sps:$4 sm:$0xff]   ;;  %v5506_v59 = vld [vmem:[%s8137_s1 + $0x3ac] ss:$16 sps:$4 sm:$0xff]  }
  0x3b   :  { %1272 = vmatpush1.bf16.msra.mxu0 %v5415_v60  ;;  %1436 = vmatpush1.bf16.msra.mxu1 %v5416_v61  ;;  %v5501_v60 = vld [vmem:[%s8137_s1 + $0x3a0] ss:$16 sps:$4 sm:$0xff]   ;;  %v5504_v61 = vld [vmem:[%s8137_s1 + $0x3a8] ss:$16 sps:$4 sm:$0xff]  }
  0x3c   :  { %1273 = vmatprep.subr.bf16.mxu0 %v5417_v62  ;;  %1437 = vmatprep.subr.bf16.mxu1 %v5419_v63  ;;  %v5509_v62 = vld [vmem:[%s8137_s1 + $0x3c4] ss:$16 sps:$4 sm:$0xff]   ;;  %v5512_v63 = vld [vmem:[%s8137_s1 + $0x3cc] ss:$16 sps:$4 sm:$0xff]  }
  0x3f   :  { %1274 = vmatpush1.bf16.msra.mxu0 %v5421_v0  ;;  %1438 = vmatpush1.bf16.msra.mxu1 %v5422_v1  ;;  %v5507_v0 = vld [vmem:[%s8137_s1 + $0x3c0] ss:$16 sps:$4 sm:$0xff]   ;;  %v5510_v1 = vld [vmem:[%s8137_s1 + $0x3c8] ss:$16 sps:$4 sm:$0xff]  }
  0x40   :  { %1284 = vmatprep.subr.bf16.mxu0 %v5425_v3  ;;  %1448 = vmatprep.subr.bf16.mxu1 %v5428_v4  ;;  %v5518_v3 = vld [vmem:[%s8137_s1 + $0x3ec] ss:$16 sps:$4 sm:$0xff]   ;;  %v5513_v4 = vld [vmem:[%s8137_s1 + $0x3e0] ss:$16 sps:$4 sm:$0xff]  }
  0x42   :  { %1276 = vmatmul.mubr.bf16.vlgmr.msra.gmra.mrb[0].mxu0 %v34_v5  ;;  %1440 = vmatmul.mubr.bf16.vlgmr.msra.gmra.mrb[0].mxu1 %v34_v5  ;;  %v5516_v5 = vld [vmem:[%s8137_s1 + $0x3e8] ss:$16 sps:$4 sm:$0xff]  }
  0x43   :  { %1285 = vmatpush1.bf16.msra.mxu0 %v5423_v6  ;;  %1449 = vmatpush1.bf16.msra.mxu1 %v5426_v7  ;;  %v5521_v6 = vld [vmem:[%s8137_s1 + $0x404] ss:$16 sps:$4 sm:$0xff]  }
  0x44   :  { %1286 = vmatprep.subr.bf16.mxu0 %v5431_v8  ;;  %1450 = vmatprep.subr.bf16.mxu1 %v5434_v9  ;;  %v29_v7 = vld [vmem:[%s8138_s0 + $0x10] sm:$0xff]  ;;  %v5524_v8 = vld [vmem:[%s8137_s1 + $0x40c] ss:$16 sps:$4 sm:$0xff]  }
  0x45   :  { %1316 = vmatprep.mubr.bf16.mxu0 %v37_v32  ;;  %1480 = vmatprep.mubr.bf16.mxu1 %v37_v32  ;;  %v5519_v9 = vld [vmem:[%s8137_s1 + $0x400] ss:$16 sps:$4 sm:$0xff]  }
  0x46   :  { %v5549_v32 = vld [vmem:[%s8137_s1 + $0x4a0] ss:$16 sps:$4 sm:$0xff]  }
  0x47   :  { %1287 = vmatpush1.bf16.msra.mxu0 %v5429_v10  ;;  %1451 = vmatpush1.bf16.msra.mxu1 %v5432_v11  ;;  %v36_v10 = vpack.c.bf16 %v29_v7, %v29_v7  ;;  %v5522_v11 = vld [vmem:[%s8137_s1 + $0x408] ss:$16 sps:$4 sm:$0xff]   ;;  %v5614_v7 = vld [vmem:[%s8137_s1 + $0x5ec] ss:$16 sps:$4 sm:$0xff]  }
  0x48   :  { %1288 = vmatprep.subr.bf16.mxu0 %v5437_v12  ;;  %1452 = vmatprep.subr.bf16.mxu1 %v5440_v13  ;;  %v5527_v12 = vld [vmem:[%s8137_s1 + $0x424] ss:$16 sps:$4 sm:$0xff]   ;;  %v5530_v13 = vld [vmem:[%s8137_s1 + $0x42c] ss:$16 sps:$4 sm:$0xff]  }
  0x4b   :  { %1289 = vmatpush1.bf16.msra.mxu0 %v5435_v14  ;;  %1453 = vmatpush1.bf16.msra.mxu1 %v5438_v15  ;;  %v32_v14 = vld [vmem:[%s8138_s0 + $0x28] sm:$0xff] }
  0x4c   :  { %1290 = vmatprep.subr.bf16.mxu0 %v5443_v16  ;;  %1454 = vmatprep.subr.bf16.mxu1 %v5446_v17  ;;  %v39_v15 = vpack.c.bf16 %v32_v14, %v32_v14  ;;  %v5525_v16 = vld [vmem:[%s8137_s1 + $0x420] ss:$16 sps:$4 sm:$0xff]   ;;  %v5528_v17 = vld [vmem:[%s8137_s1 + $0x428] ss:$16 sps:$4 sm:$0xff]  }
  0x4d   :  { %v5615_v14 = vld [vmem:[%s8137_s1 + $0x600] ss:$16 sps:$4 sm:$0xff]  }
  0x4f   :  { %1291 = vmatpush1.bf16.msra.mxu0 %v5441_v18  ;;  %1455 = vmatpush1.bf16.msra.mxu1 %v5444_v19  ;;  %v5533_v18 = vld [vmem:[%s8137_s1 + $0x444] ss:$16 sps:$4 sm:$0xff]   ;;  %v5536_v19 = vld [vmem:[%s8137_s1 + $0x44c] ss:$16 sps:$4 sm:$0xff]  }
  0x50   :  { %1292 = vmatprep.subr.bf16.mxu0 %v5449_v20  ;;  %1456 = vmatprep.subr.bf16.mxu1 %v5452_v21  ;;  %v5531_v20 = vld [vmem:[%s8137_s1 + $0x440] ss:$16 sps:$4 sm:$0xff]   ;;  %v5534_v21 = vld [vmem:[%s8137_s1 + $0x448] ss:$16 sps:$4 sm:$0xff]  }
  0x53   :  { %1293 = vmatpush1.bf16.msra.mxu0 %v5447_v22  ;;  %1457 = vmatpush1.bf16.msra.mxu1 %v5450_v23  ;;  %v5539_v22 = vld [vmem:[%s8137_s1 + $0x464] ss:$16 sps:$4 sm:$0xff]   ;;  %v5542_v23 = vld [vmem:[%s8137_s1 + $0x46c] ss:$16 sps:$4 sm:$0xff]  }
  0x54   :  { %1294 = vmatprep.subr.bf16.mxu0 %v5455_v24  ;;  %1458 = vmatprep.subr.bf16.mxu1 %v5458_v25  ;;  %v5537_v24 = vld [vmem:[%s8137_s1 + $0x460] ss:$16 sps:$4 sm:$0xff]   ;;  %v5540_v25 = vld [vmem:[%s8137_s1 + $0x468] ss:$16 sps:$4 sm:$0xff]  }
  0x57   :  { %1295 = vmatpush1.bf16.msra.mxu0 %v5453_v26  ;;  %1459 = vmatpush1.bf16.msra.mxu1 %v5456_v27  ;;  %v5545_v26 = vld [vmem:[%s8137_s1 + $0x484] ss:$16 sps:$4 sm:$0xff]   ;;  %v5548_v27 = vld [vmem:[%s8137_s1 + $0x48c] ss:$16 sps:$4 sm:$0xff]  }
  0x58   :  { %1296 = vmatprep.subr.bf16.mxu0 %v5461_v28  ;;  %1460 = vmatprep.subr.bf16.mxu1 %v5464_v29  ;;  %v5543_v28 = vld [vmem:[%s8137_s1 + $0x480] ss:$16 sps:$4 sm:$0xff]   ;;  %v5546_v29 = vld [vmem:[%s8137_s1 + $0x488] ss:$16 sps:$4 sm:$0xff]  }
  0x5b   :  { %1297 = vmatpush1.bf16.msra.mxu0 %v5459_v31  ;;  %1461 = vmatpush1.bf16.msra.mxu1 %v5462_v33  ;;  %v5554_v31 = vld [vmem:[%s8137_s1 + $0x4ac] ss:$16 sps:$4 sm:$0xff]   ;;  %v5552_v33 = vld [vmem:[%s8137_s1 + $0x4a8] ss:$16 sps:$4 sm:$0xff]  }
  0x5c   :  { %1298 = vmatprep.subr.bf16.mxu0 %v5467_v34  ;;  %1462 = vmatprep.subr.bf16.mxu1 %v5470_v35  ;;  %v5557_v34 = vld [vmem:[%s8137_s1 + $0x4c4] ss:$16 sps:$4 sm:$0xff]   ;;  %v5560_v35 = vld [vmem:[%s8137_s1 + $0x4cc] ss:$16 sps:$4 sm:$0xff]  }
  0x5f   :  { %1299 = vmatpush1.bf16.msra.mxu0 %v5465_v36  ;;  %1463 = vmatpush1.bf16.msra.mxu1 %v5468_v37  ;;  %v5555_v36 = vld [vmem:[%s8137_s1 + $0x4c0] ss:$16 sps:$4 sm:$0xff]   ;;  %v5558_v37 = vld [vmem:[%s8137_s1 + $0x4c8] ss:$16 sps:$4 sm:$0xff]  }
  0x60   :  { %1300 = vmatprep.subr.bf16.mxu0 %v5473_v38  ;;  %1464 = vmatprep.subr.bf16.mxu1 %v5476_v39  ;;  %v5563_v38 = vld [vmem:[%s8137_s1 + $0x4e4] ss:$16 sps:$4 sm:$0xff]   ;;  %v5566_v39 = vld [vmem:[%s8137_s1 + $0x4ec] ss:$16 sps:$4 sm:$0xff]  }
  0x63   :  { %1301 = vmatpush1.bf16.msra.mxu0 %v5471_v40  ;;  %1465 = vmatpush1.bf16.msra.mxu1 %v5474_v41  ;;  %v5561_v40 = vld [vmem:[%s8137_s1 + $0x4e0] ss:$16 sps:$4 sm:$0xff]   ;;  %v5564_v41 = vld [vmem:[%s8137_s1 + $0x4e8] ss:$16 sps:$4 sm:$0xff]  }
  0x64   :  { %1302 = vmatprep.subr.bf16.mxu0 %v5479_v42  ;;  %1466 = vmatprep.subr.bf16.mxu1 %v5482_v43  ;;  %v5569_v42 = vld [vmem:[%s8137_s1 + $0x504] ss:$16 sps:$4 sm:$0xff]   ;;  %v5572_v43 = vld [vmem:[%s8137_s1 + $0x50c] ss:$16 sps:$4 sm:$0xff]  }
  0x67   :  { %1303 = vmatpush1.bf16.msra.mxu0 %v5477_v44  ;;  %1467 = vmatpush1.bf16.msra.mxu1 %v5480_v45  ;;  %v5567_v44 = vld [vmem:[%s8137_s1 + $0x500] ss:$16 sps:$4 sm:$0xff]   ;;  %v5570_v45 = vld [vmem:[%s8137_s1 + $0x508] ss:$16 sps:$4 sm:$0xff]  }
  0x68   :  { %1304 = vmatprep.subr.bf16.mxu0 %v5485_v46  ;;  %1468 = vmatprep.subr.bf16.mxu1 %v5488_v47  ;;  %v5575_v46 = vld [vmem:[%s8137_s1 + $0x524] ss:$16 sps:$4 sm:$0xff]   ;;  %v5578_v47 = vld [vmem:[%s8137_s1 + $0x52c] ss:$16 sps:$4 sm:$0xff]  }
  0x6b   :  { %1305 = vmatpush1.bf16.msra.mxu0 %v5483_v48  ;;  %1469 = vmatpush1.bf16.msra.mxu1 %v5486_v49  ;;  %v5573_v48 = vld [vmem:[%s8137_s1 + $0x520] ss:$16 sps:$4 sm:$0xff]   ;;  %v5576_v49 = vld [vmem:[%s8137_s1 + $0x528] ss:$16 sps:$4 sm:$0xff]  }
  0x6c   :  { %1306 = vmatprep.subr.bf16.mxu0 %v5491_v50  ;;  %1470 = vmatprep.subr.bf16.mxu1 %v5494_v51  ;;  %v5581_v50 = vld [vmem:[%s8137_s1 + $0x544] ss:$16 sps:$4 sm:$0xff]   ;;  %v5584_v51 = vld [vmem:[%s8137_s1 + $0x54c] ss:$16 sps:$4 sm:$0xff]  }
  0x6f   :  { %1307 = vmatpush1.bf16.msra.mxu0 %v5489_v52  ;;  %1471 = vmatpush1.bf16.msra.mxu1 %v5492_v53  ;;  %v5579_v52 = vld [vmem:[%s8137_s1 + $0x540] ss:$16 sps:$4 sm:$0xff]   ;;  %v5582_v53 = vld [vmem:[%s8137_s1 + $0x548] ss:$16 sps:$4 sm:$0xff]  }
  0x70   :  { %1308 = vmatprep.subr.bf16.mxu0 %v5497_v54  ;;  %1472 = vmatprep.subr.bf16.mxu1 %v5500_v55  ;;  %v5587_v54 = vld [vmem:[%s8137_s1 + $0x564] ss:$16 sps:$4 sm:$0xff]   ;;  %v5590_v55 = vld [vmem:[%s8137_s1 + $0x56c] ss:$16 sps:$4 sm:$0xff]  }
  0x73   :  { %1309 = vmatpush1.bf16.msra.mxu0 %v5495_v56  ;;  %1473 = vmatpush1.bf16.msra.mxu1 %v5498_v57  ;;  %v5585_v56 = vld [vmem:[%s8137_s1 + $0x560] ss:$16 sps:$4 sm:$0xff]   ;;  %v5588_v57 = vld [vmem:[%s8137_s1 + $0x568] ss:$16 sps:$4 sm:$0xff]  }
  0x74   :  { %1310 = vmatprep.subr.bf16.mxu0 %v5503_v58  ;;  %1474 = vmatprep.subr.bf16.mxu1 %v5506_v59  ;;  %v5593_v58 = vld [vmem:[%s8137_s1 + $0x584] ss:$16 sps:$4 sm:$0xff]   ;;  %v5596_v59 = vld [vmem:[%s8137_s1 + $0x58c] ss:$16 sps:$4 sm:$0xff]  }
  0x77   :  { %1311 = vmatpush1.bf16.msra.mxu0 %v5501_v60  ;;  %1475 = vmatpush1.bf16.msra.mxu1 %v5504_v61  ;;  %v5591_v60 = vld [vmem:[%s8137_s1 + $0x580] ss:$16 sps:$4 sm:$0xff]   ;;  %v5594_v61 = vld [vmem:[%s8137_s1 + $0x588] ss:$16 sps:$4 sm:$0xff]  }
  0x78   :  { %1312 = vmatprep.subr.bf16.mxu0 %v5509_v62  ;;  %1476 = vmatprep.subr.bf16.mxu1 %v5512_v63  ;;  %v5599_v62 = vld [vmem:[%s8137_s1 + $0x5a4] ss:$16 sps:$4 sm:$0xff]   ;;  %v5602_v63 = vld [vmem:[%s8137_s1 + $0x5ac] ss:$16 sps:$4 sm:$0xff]  }
  0x7b   :  { %1313 = vmatpush1.bf16.msra.mxu0 %v5507_v0  ;;  %1477 = vmatpush1.bf16.msra.mxu1 %v5510_v1  ;;  %v5597_v0 = vld [vmem:[%s8137_s1 + $0x5a0] ss:$16 sps:$4 sm:$0xff]   ;;  %v5600_v1 = vld [vmem:[%s8137_s1 + $0x5a8] ss:$16 sps:$4 sm:$0xff]  }
  0x7c   :  { %1314 = vmatprep.subr.bf16.mxu0 %v5515_v2  ;;  %1478 = vmatprep.subr.bf16.mxu1 %v5518_v3  ;;  %v5605_v2 = vld [vmem:[%s8137_s1 + $0x5c4] ss:$16 sps:$4 sm:$0xff]   ;;  %v5608_v3 = vld [vmem:[%s8137_s1 + $0x5cc] ss:$16 sps:$4 sm:$0xff]  }
  0x7f   :  { %1315 = vmatpush1.bf16.msra.mxu0 %v5513_v4  ;;  %1479 = vmatpush1.bf16.msra.mxu1 %v5516_v5  ;;  %v5603_v4 = vld [vmem:[%s8137_s1 + $0x5c0] ss:$16 sps:$4 sm:$0xff]   ;;  %v5606_v5 = vld [vmem:[%s8137_s1 + $0x5c8] ss:$16 sps:$4 sm:$0xff]  }
  0x80   :  { %1325 = vmatprep.subr.bf16.mxu0 %v5521_v6  ;;  %1489 = vmatprep.subr.bf16.mxu1 %v5524_v8  ;;  %v5611_v6 = vld [vmem:[%s8137_s1 + $0x5e4] ss:$16 sps:$4 sm:$0xff]   ;;  %v5609_v8 = vld [vmem:[%s8137_s1 + $0x5e0] ss:$16 sps:$4 sm:$0xff]  }
  0x82   :  { %1317 = vmatmul.mubr.bf16.vlgmr.msra.gmra.mrb[0].mxu0 %v36_v10  ;;  %1481 = vmatmul.mubr.bf16.vlgmr.msra.gmra.mrb[0].mxu1 %v36_v10  ;;  %v31_v10 = vld [vmem:[%s8138_s0 + $0x20] sm:$0xff] }
  0x83   :  { %1326 = vmatpush1.bf16.msra.mxu0 %v5519_v9  ;;  %1490 = vmatpush1.bf16.msra.mxu1 %v5522_v11  ;;  %v5612_v9 = vld [vmem:[%s8137_s1 + $0x5e8] ss:$16 sps:$4 sm:$0xff]   ;;  %v5617_v11 = vld [vmem:[%s8137_s1 + $0x604] ss:$16 sps:$4 sm:$0xff]  }
  0x84   :  { %1327 = vmatprep.subr.bf16.mxu0 %v5527_v12  ;;  %1491 = vmatprep.subr.bf16.mxu1 %v5530_v13  ;;  %v5620_v12 = vld [vmem:[%s8137_s1 + $0x60c] ss:$16 sps:$4 sm:$0xff]   ;;  %v38_v13 = vpack.c.bf16 %v31_v10, %v31_v10  ;;  %v5747_v10 = vld [vmem:[%s8140_s3 + $0xa0] ss:$8 sps:$4 sm:$0xff]  }
  0x85   :  { %1357 = vmatprep.mubr.bf16.mxu0 %v39_v15  ;;  %1521 = vmatprep.mubr.bf16.mxu1 %v39_v15  ;;  %v5618_v15 = vld [vmem:[%s8137_s1 + $0x608] ss:$16 sps:$4 sm:$0xff]  }
  0x87   :  { %1328 = vmatpush1.bf16.msra.mxu0 %v5525_v16  ;;  %1492 = vmatpush1.bf16.msra.mxu1 %v5528_v17  ;;  %v5623_v16 = vld [vmem:[%s8139_s2 + $0x4] ss:$8 sps:$4 sm:$0xff]   ;;  %v6209_v17 = vmov 0  }
  0x88   :  { %1329 = vmatprep.subr.bf16.mxu0 %v5533_v18  ;;  %1493 = vmatprep.subr.bf16.mxu1 %v5536_v19  ;;  %v33_v18 = vld [vmem:[%s8138_s0 + $0x30] sm:$0xff] }
  0x89   :  { %v40_v19 = vpack.c.bf16 %v33_v18, %v33_v18 }
  0x8b   :  { %1330 = vmatpush1.bf16.msra.mxu0 %v5531_v20  ;;  %1494 = vmatpush1.bf16.msra.mxu1 %v5534_v21  ;;  %v5621_v20 = vld [vmem:[%s8139_s2] ss:$8 sps:$4 sm:$0xff]   ;;  %v5626_v21 = vld [vmem:[%s8139_s2 + $0x14] ss:$8 sps:$4 sm:$0xff]  }
  0x8c   :  { %1331 = vmatprep.subr.bf16.mxu0 %v5539_v22  ;;  %1495 = vmatprep.subr.bf16.mxu1 %v5542_v23  ;;  %v5624_v22 = vld [vmem:[%s8139_s2 + $0x10] ss:$8 sps:$4 sm:$0xff]   ;;  %v5629_v23 = vld [vmem:[%s8139_s2 + $0x24] ss:$8 sps:$4 sm:$0xff]  }
  0x8f   :  { %1332 = vmatpush1.bf16.msra.mxu0 %v5537_v24  ;;  %1496 = vmatpush1.bf16.msra.mxu1 %v5540_v25  ;;  %v5627_v24 = vld [vmem:[%s8139_s2 + $0x20] ss:$8 sps:$4 sm:$0xff]   ;;  %v5632_v25 = vld [vmem:[%s8139_s2 + $0x34] ss:$8 sps:$4 sm:$0xff]  }
  0x90   :  { %1333 = vmatprep.subr.bf16.mxu0 %v5545_v26  ;;  %1497 = vmatprep.subr.bf16.mxu1 %v5548_v27  ;;  %v5630_v26 = vld [vmem:[%s8139_s2 + $0x30] ss:$8 sps:$4 sm:$0xff]   ;;  %v5635_v27 = vld [vmem:[%s8139_s2 + $0x44] ss:$8 sps:$4 sm:$0xff]  }
  0x93   :  { %1334 = vmatpush1.bf16.msra.mxu0 %v5543_v28  ;;  %1498 = vmatpush1.bf16.msra.mxu1 %v5546_v29  ;;  %v5633_v28 = vld [vmem:[%s8139_s2 + $0x40] ss:$8 sps:$4 sm:$0xff]   ;;  %v5638_v29 = vld [vmem:[%s8139_s2 + $0x54] ss:$8 sps:$4 sm:$0xff]  }
  0x94   :  { %1335 = vmatprep.subr.bf16.mxu0 %v5551_v30  ;;  %1499 = vmatprep.subr.bf16.mxu1 %v5554_v31  ;;  %v5636_v30 = vld [vmem:[%s8139_s2 + $0x50] ss:$8 sps:$4 sm:$0xff]   ;;  %v5641_v31 = vld [vmem:[%s8139_s2 + $0x64] ss:$8 sps:$4 sm:$0xff]  }
  0x97   :  { %1336 = vmatpush1.bf16.msra.mxu0 %v5549_v32  ;;  %1500 = vmatpush1.bf16.msra.mxu1 %v5552_v33  ;;  %v5639_v32 = vld [vmem:[%s8139_s2 + $0x60] ss:$8 sps:$4 sm:$0xff]   ;;  %v5644_v33 = vld [vmem:[%s8139_s2 + $0x74] ss:$8 sps:$4 sm:$0xff]  }
  0x98   :  { %1337 = vmatprep.subr.bf16.mxu0 %v5557_v34  ;;  %1501 = vmatprep.subr.bf16.mxu1 %v5560_v35  ;;  %v5642_v34 = vld [vmem:[%s8139_s2 + $0x70] ss:$8 sps:$4 sm:$0xff]   ;;  %v5647_v35 = vld [vmem:[%s8139_s2 + $0x84] ss:$8 sps:$4 sm:$0xff]  }
  0x9b   :  { %1338 = vmatpush1.bf16.msra.mxu0 %v5555_v36  ;;  %1502 = vmatpush1.bf16.msra.mxu1 %v5558_v37  ;;  %v5645_v36 = vld [vmem:[%s8139_s2 + $0x80] ss:$8 sps:$4 sm:$0xff]   ;;  %v5650_v37 = vld [vmem:[%s8139_s2 + $0x94] ss:$8 sps:$4 sm:$0xff]  }
  0x9c   :  { %1339 = vmatprep.subr.bf16.mxu0 %v5563_v38  ;;  %1503 = vmatprep.subr.bf16.mxu1 %v5566_v39  ;;  %v5648_v38 = vld [vmem:[%s8139_s2 + $0x90] ss:$8 sps:$4 sm:$0xff]   ;;  %v5653_v39 = vld [vmem:[%s8139_s2 + $0xa4] ss:$8 sps:$4 sm:$0xff]  }
  0x9f   :  { %1340 = vmatpush1.bf16.msra.mxu0 %v5561_v40  ;;  %1504 = vmatpush1.bf16.msra.mxu1 %v5564_v41  ;;  %v5651_v40 = vld [vmem:[%s8139_s2 + $0xa0] ss:$8 sps:$4 sm:$0xff]   ;;  %v5656_v41 = vld [vmem:[%s8139_s2 + $0xb4] ss:$8 sps:$4 sm:$0xff]  }
  0xa0   :  { %1341 = vmatprep.subr.bf16.mxu0 %v5569_v42  ;;  %1505 = vmatprep.subr.bf16.mxu1 %v5572_v43  ;;  %v5654_v42 = vld [vmem:[%s8139_s2 + $0xb0] ss:$8 sps:$4 sm:$0xff]   ;;  %v5659_v43 = vld [vmem:[%s8139_s2 + $0xc4] ss:$8 sps:$4 sm:$0xff]  }
  0xa3   :  { %1342 = vmatpush1.bf16.msra.mxu0 %v5567_v44  ;;  %1506 = vmatpush1.bf16.msra.mxu1 %v5570_v45  ;;  %v5657_v44 = vld [vmem:[%s8139_s2 + $0xc0] ss:$8 sps:$4 sm:$0xff]   ;;  %v5662_v45 = vld [vmem:[%s8139_s2 + $0xd4] ss:$8 sps:$4 sm:$0xff]  }
  0xa4   :  { %1343 = vmatprep.subr.bf16.mxu0 %v5575_v46  ;;  %1507 = vmatprep.subr.bf16.mxu1 %v5578_v47  ;;  %v5660_v46 = vld [vmem:[%s8139_s2 + $0xd0] ss:$8 sps:$4 sm:$0xff]   ;;  %v5665_v47 = vld [vmem:[%s8139_s2 + $0xe4] ss:$8 sps:$4 sm:$0xff]  }
  0xa7   :  { %1344 = vmatpush1.bf16.msra.mxu0 %v5573_v48  ;;  %1508 = vmatpush1.bf16.msra.mxu1 %v5576_v49  ;;  %v5663_v48 = vld [vmem:[%s8139_s2 + $0xe0] ss:$8 sps:$4 sm:$0xff]   ;;  %v5668_v49 = vld [vmem:[%s8139_s2 + $0xf4] ss:$8 sps:$4 sm:$0xff]  }
  0xa8   :  { %1345 = vmatprep.subr.bf16.mxu0 %v5581_v50  ;;  %1509 = vmatprep.subr.bf16.mxu1 %v5584_v51  ;;  %v5666_v50 = vld [vmem:[%s8139_s2 + $0xf0] ss:$8 sps:$4 sm:$0xff]   ;;  %v5671_v51 = vld [vmem:[%s8139_s2 + $0x104] ss:$8 sps:$4 sm:$0xff]  }
  0xab   :  { %1346 = vmatpush1.bf16.msra.mxu0 %v5579_v52  ;;  %1510 = vmatpush1.bf16.msra.mxu1 %v5582_v53  ;;  %v5717_v52 = vld [vmem:[%s8140_s3] ss:$8 sps:$4 sm:$0xff]   ;;  %v5719_v53 = vld [vmem:[%s8140_s3 + $0x4] ss:$8 sps:$4 sm:$0xff]  }
  0xac   :  { %1347 = vmatprep.subr.bf16.mxu0 %v5587_v54  ;;  %1511 = vmatprep.subr.bf16.mxu1 %v5590_v55  ;;  %v5722_v54 = vld [vmem:[%s8140_s3 + $0x14] ss:$8 sps:$4 sm:$0xff]   ;;  %v5720_v55 = vld [vmem:[%s8140_s3 + $0x10] ss:$8 sps:$4 sm:$0xff]  }
  0xaf   :  { %1348 = vmatpush1.bf16.msra.mxu0 %v5585_v56  ;;  %1512 = vmatpush1.bf16.msra.mxu1 %v5588_v57  ;;  %v5725_v56 = vld [vmem:[%s8140_s3 + $0x24] ss:$8 sps:$4 sm:$0xff]   ;;  %v5723_v57 = vld [vmem:[%s8140_s3 + $0x20] ss:$8 sps:$4 sm:$0xff]  }
  0xb0   :  { %1349 = vmatprep.subr.bf16.mxu0 %v5593_v58  ;;  %1513 = vmatprep.subr.bf16.mxu1 %v5596_v59  ;;  %v5728_v58 = vld [vmem:[%s8140_s3 + $0x34] ss:$8 sps:$4 sm:$0xff]   ;;  %v5726_v59 = vld [vmem:[%s8140_s3 + $0x30] ss:$8 sps:$4 sm:$0xff]  }
  0xb3   :  { %1350 = vmatpush1.bf16.msra.mxu0 %v5591_v60  ;;  %1514 = vmatpush1.bf16.msra.mxu1 %v5594_v61  ;;  %v5731_v60 = vld [vmem:[%s8140_s3 + $0x44] ss:$8 sps:$4 sm:$0xff]   ;;  %v5729_v61 = vld [vmem:[%s8140_s3 + $0x40] ss:$8 sps:$4 sm:$0xff]  }
  0xb4   :  { %1351 = vmatprep.subr.bf16.mxu0 %v5599_v62  ;;  %1515 = vmatprep.subr.bf16.mxu1 %v5602_v63  ;;  %v5734_v62 = vld [vmem:[%s8140_s3 + $0x54] ss:$8 sps:$4 sm:$0xff]   ;;  %v5732_v63 = vld [vmem:[%s8140_s3 + $0x50] ss:$8 sps:$4 sm:$0xff]  }
  0xb7   :  { %1352 = vmatpush1.bf16.msra.mxu0 %v5597_v0  ;;  %1516 = vmatpush1.bf16.msra.mxu1 %v5600_v1  ;;  %v5737_v0 = vld [vmem:[%s8140_s3 + $0x64] ss:$8 sps:$4 sm:$0xff]   ;;  %v5735_v1 = vld [vmem:[%s8140_s3 + $0x60] ss:$8 sps:$4 sm:$0xff]  }
  0xb8   :  { %1353 = vmatprep.subr.bf16.mxu0 %v5605_v2  ;;  %1517 = vmatprep.subr.bf16.mxu1 %v5608_v3  ;;  %v5740_v2 = vld [vmem:[%s8140_s3 + $0x74] ss:$8 sps:$4 sm:$0xff]   ;;  %v5738_v3 = vld [vmem:[%s8140_s3 + $0x70] ss:$8 sps:$4 sm:$0xff]  }
  0xbb   :  { %1354 = vmatpush1.bf16.msra.mxu0 %v5603_v4  ;;  %1518 = vmatpush1.bf16.msra.mxu1 %v5606_v5  ;;  %v5743_v4 = vld [vmem:[%s8140_s3 + $0x84] ss:$8 sps:$4 sm:$0xff]   ;;  %v5741_v5 = vld [vmem:[%s8140_s3 + $0x80] ss:$8 sps:$4 sm:$0xff]  }
  0xbc   :  { %1355 = vmatprep.subr.bf16.mxu0 %v5611_v6  ;;  %1519 = vmatprep.subr.bf16.mxu1 %v5614_v7  ;;  %v5746_v6 = vld [vmem:[%s8140_s3 + $0x94] ss:$8 sps:$4 sm:$0xff]   ;;  %v5744_v7 = vld [vmem:[%s8140_s3 + $0x90] ss:$8 sps:$4 sm:$0xff]  }
  0xbf   :  { %1356 = vmatpush1.bf16.msra.mxu0 %v5609_v8  ;;  %1520 = vmatpush1.bf16.msra.mxu1 %v5612_v9  ;;  %v5749_v8 = vld [vmem:[%s8140_s3 + $0xa4] ss:$8 sps:$4 sm:$0xff]   ;;  %v239_v9 = vlaneseq }
  0xc0   :  { %1366 = vmatprep.subr.bf16.mxu0 %v5617_v11  ;;  %1530 = vmatprep.subr.bf16.mxu1 %v5620_v12  ;;  %v5752_v11 = vld [vmem:[%s8140_s3 + $0xb4] ss:$8 sps:$4 sm:$0xff]  }
  0xc1   :  { %v7029_v12 = vshrl.u32 %v239_v9, 7 }
  0xc2   :  { %1358 = vmatmul.mubr.bf16.vlgmr.msra.gmra.mrb[0].mxu0 %v38_v13  ;;  %1522 = vmatmul.mubr.bf16.vlgmr.msra.gmra.mrb[0].mxu1 %v38_v13  ;;  %v5750_v13 = vld [vmem:[%s8140_s3 + $0xb0] ss:$8 sps:$4 sm:$0xff]  }
  0xc3   :  { %1367 = vmatpush1.bf16.msra.mxu0 %v5615_v14  ;;  %1531 = vmatpush1.bf16.msra.mxu1 %v5618_v15  ;;  %v5755_v14 = vld [vmem:[%s8140_s3 + $0xc4] ss:$8 sps:$4 sm:$0xff]   ;;  %v7040_v15 = vld [vmem:[%s8141_s6] ss:$8 sm:$0xf]  ;;  %v7049_v18 = vsub.s32 3, %v7029_v12 }
  0xc4   :  { %1398 = vmatprep.mubr.bf16.mxu0 %v6209_v17  ;;  %1562 = vmatprep.mubr.bf16.mxu1 %v6209_v17  ;;  %v7046_v17 = vsub.s32 1, %v7029_v12 }
  0xc5   :  { %1976 = vmatprep.subr.bf16.mxu0 %v5623_v16  ;;  %2267 = vmatprep.subr.bf16.mxu1 %v5719_v53  ;;  %v7043_v16 = vsub.s32 0, %v7029_v12  ;;  %v5689_v53 = vld [vmem:[%s8139_s2 + $0x164] ss:$8 sps:$4 sm:$0xff]  }
  0xce   :  { %4839 = vmatmul.mubr.msk.bf16.vlgmr.msra.gmra.mrb[0].mxu0 %vm1239_vm0, %v40_v19  ;;  %4840 = vmatmul.mubr.msk.bf16.vlgmr.msra.gmra.mrb[0].mxu1 %vm1239_vm0, %v40_v19  ;;  %v5753_v19 = vld [vmem:[%s8140_s3 + $0xc0] ss:$8 sps:$4 sm:$0xff]  }
  0xcf   :  { %1977 = vmatpush1.bf16.msra.mxu0 %v5621_v20  ;;  %2268 = vmatpush1.bf16.msra.mxu1 %v5717_v52  ;;  %v5758_v20 = vld [vmem:[%s8140_s3 + $0xd4] ss:$8 sps:$4 sm:$0xff]   ;;  %v5684_v52 = vld [vmem:[%s8139_s2 + $0x150] ss:$8 sps:$4 sm:$0xff]  }
  0xd0   :  { %1978 = vmatprep.subr.bf16.mxu0 %v5626_v21  ;;  %2269 = vmatprep.subr.bf16.mxu1 %v5722_v54  ;;  %v242_v21 = vrot.slane %v7040_v15, %v7043_v16  ;;  %v5687_v54 = vld [vmem:[%s8139_s2 + $0x160] ss:$8 sps:$4 sm:$0xff]  }
  0xd3   :  { %1979 = vmatpush1.bf16.msra.mxu0 %v5624_v22  ;;  %2270 = vmatpush1.bf16.msra.mxu1 %v5720_v55  ;;  %v246_v22 = vrot.slane %v7040_v15, %v7046_v17  ;;  %v5692_v55 = vld [vmem:[%s8139_s2 + $0x174] ss:$8 sps:$4 sm:$0xff]  }
  0xd4   :  { %1980 = vmatprep.subr.bf16.mxu0 %v5629_v23  ;;  %2271 = vmatprep.subr.bf16.mxu1 %v5725_v56  ;;  %v254_v23 = vrot.slane %v7040_v15, %v7049_v18  ;;  %v5690_v56 = vld [vmem:[%s8139_s2 + $0x170] ss:$8 sps:$4 sm:$0xff]  }
  0xd7   :  { %1981 = vmatpush1.bf16.msra.mxu0 %v5627_v24  ;;  %2272 = vmatpush1.bf16.msra.mxu1 %v5723_v57  ;;  %v5756_v24 = vld [vmem:[%s8140_s3 + $0xd0] ss:$8 sps:$4 sm:$0xff]   ;;  %v5695_v57 = vld [vmem:[%s8139_s2 + $0x184] ss:$8 sps:$4 sm:$0xff]  }
  0xd8   :  { %1982 = vmatprep.subr.bf16.mxu0 %v5632_v25  ;;  %2273 = vmatprep.subr.bf16.mxu1 %v5728_v58  ;;  %v5693_v58 = vld [vmem:[%s8139_s2 + $0x180] ss:$8 sps:$4 sm:$0xff]  }
  0xdb   :  { %1983 = vmatpush1.bf16.msra.mxu0 %v5630_v26  ;;  %2274 = vmatpush1.bf16.msra.mxu1 %v5726_v59  ;;  %v5698_v59 = vld [vmem:[%s8139_s2 + $0x194] ss:$8 sps:$4 sm:$0xff]  }
  0xdc   :  { %1984 = vmatprep.subr.bf16.mxu0 %v5635_v27  ;;  %2275 = vmatprep.subr.bf16.mxu1 %v5731_v60  ;;  %v5696_v60 = vld [vmem:[%s8139_s2 + $0x190] ss:$8 sps:$4 sm:$0xff]  }
  0xdf   :  { %1985 = vmatpush1.bf16.msra.mxu0 %v5633_v28  ;;  %2276 = vmatpush1.bf16.msra.mxu1 %v5729_v61  ;;  %v5701_v61 = vld [vmem:[%s8139_s2 + $0x1a4] ss:$8 sps:$4 sm:$0xff]  }
  0xe0   :  { %1986 = vmatprep.subr.bf16.mxu0 %v5638_v29  ;;  %2277 = vmatprep.subr.bf16.mxu1 %v5734_v62  ;;  %v5699_v62 = vld [vmem:[%s8139_s2 + $0x1a0] ss:$8 sps:$4 sm:$0xff]  }
  0xe3   :  { %1987 = vmatpush1.bf16.msra.mxu0 %v5636_v30  ;;  %2278 = vmatpush1.bf16.msra.mxu1 %v5732_v63  ;;  %v5704_v63 = vld [vmem:[%s8139_s2 + $0x1b4] ss:$8 sps:$4 sm:$0xff]  }
  0xe4   :  { %1988 = vmatprep.subr.bf16.mxu0 %v5641_v31  ;;  %2279 = vmatprep.subr.bf16.mxu1 %v5737_v0  ;;  %v5702_v0 = vld [vmem:[%s8139_s2 + $0x1b0] ss:$8 sps:$4 sm:$0xff]  }
  0xe7   :  { %1989 = vmatpush1.bf16.msra.mxu0 %v5639_v32  ;;  %2280 = vmatpush1.bf16.msra.mxu1 %v5735_v1  ;;  %v5707_v1 = vld [vmem:[%s8139_s2 + $0x1c4] ss:$8 sps:$4 sm:$0xff]  }
  0xe8   :  { %1990 = vmatprep.subr.bf16.mxu0 %v5644_v33  ;;  %2281 = vmatprep.subr.bf16.mxu1 %v5740_v2  ;;  %v5705_v2 = vld [vmem:[%s8139_s2 + $0x1c0] ss:$8 sps:$4 sm:$0xff]  }
  0xeb   :  { %1991 = vmatpush1.bf16.msra.mxu0 %v5642_v34  ;;  %2282 = vmatpush1.bf16.msra.mxu1 %v5738_v3  ;;  %v7144_v3 = vsub.s32 2, %v7029_v12 }
  0xec   :  { %1992 = vmatprep.subr.bf16.mxu0 %v5647_v35  ;;  %2283 = vmatprep.subr.bf16.mxu1 %v5743_v4  ;;  %v5710_v4 = vld [vmem:[%s8139_s2 + $0x1d4] ss:$8 sps:$4 sm:$0xff]  }
  0xef   :  { %1993 = vmatpush1.bf16.msra.mxu0 %v5645_v36  ;;  %2284 = vmatpush1.bf16.msra.mxu1 %v5741_v5  ;;  %v5708_v5 = vld [vmem:[%s8139_s2 + $0x1d0] ss:$8 sps:$4 sm:$0xff]  }
  0xf0   :  { %1994 = vmatprep.subr.bf16.mxu0 %v5650_v37  ;;  %2285 = vmatprep.subr.bf16.mxu1 %v5746_v6  ;;  %v250_v6 = vrot.slane %v7040_v15, %v7144_v3  ;;  %v5761_v15 = vld [vmem:[%s8140_s3 + $0xe4] ss:$8 sps:$4 sm:$0xff]  }
  0xf3   :  { %1995 = vmatpush1.bf16.msra.mxu0 %v5648_v38  ;;  %2286 = vmatpush1.bf16.msra.mxu1 %v5744_v7  ;;  %v5713_v7 = vld [vmem:[%s8139_s2 + $0x1e4] ss:$8 sps:$4 sm:$0xff]  }
  0xf4   :  { %1996 = vmatprep.subr.bf16.mxu0 %v5653_v39  ;;  %2287 = vmatprep.subr.bf16.mxu1 %v5749_v8  ;;  %v5711_v8 = vld [vmem:[%s8139_s2 + $0x1e0] ss:$8 sps:$4 sm:$0xff]  }
  0xf7   :  { %1997 = vmatpush1.bf16.msra.mxu0 %v5651_v40  ;;  %2288 = vmatpush1.bf16.msra.mxu1 %v5747_v10  ;;  %v5669_v40 = vld [vmem:[%s8139_s2 + $0x100] ss:$8 sps:$4 sm:$0xff]   ;;  %v5716_v10 = vld [vmem:[%s8139_s2 + $0x1f4] ss:$8 sps:$4 sm:$0xff]  }
  0xf8   :  { %1998 = vmatprep.subr.bf16.mxu0 %v5656_v41  ;;  %2289 = vmatprep.subr.bf16.mxu1 %v5752_v11  ;;  %v5714_v11 = vld [vmem:[%s8139_s2 + $0x1f0] ss:$8 sps:$4 sm:$0xff]  }
  0xfb   :  { %1999 = vmatpush1.bf16.msra.mxu0 %v5654_v42  ;;  %2290 = vmatpush1.bf16.msra.mxu1 %v5750_v13  ;;  %v5674_v42 = vld [vmem:[%s8139_s2 + $0x114] ss:$8 sps:$4 sm:$0xff]  }
  0xfc   :  { %2000 = vmatprep.subr.bf16.mxu0 %v5659_v43  ;;  %2291 = vmatprep.subr.bf16.mxu1 %v5755_v14 }
  0xff   :  { %2001 = vmatpush1.bf16.msra.mxu0 %v5657_v44  ;;  %2292 = vmatpush1.bf16.msra.mxu1 %v5753_v19  ;;  %v5672_v44 = vld [vmem:[%s8139_s2 + $0x110] ss:$8 sps:$4 sm:$0xff]   ;;  %v5759_v19 = vld [vmem:[%s8140_s3 + $0xe0] ss:$8 sps:$4 sm:$0xff]  }
 0x100   :  { %2002 = vmatprep.subr.bf16.mxu0 %v5662_v45  ;;  %2293 = vmatprep.subr.bf16.mxu1 %v5758_v20  ;;  %v5677_v45 = vld [vmem:[%s8139_s2 + $0x124] ss:$8 sps:$4 sm:$0xff]   ;;  %v5764_v20 = vld [vmem:[%s8140_s3 + $0xf4] ss:$8 sps:$4 sm:$0xff]  }
 0x103   :  { %2003 = vmatpush1.bf16.msra.mxu0 %v5660_v46  ;;  %2294 = vmatpush1.bf16.msra.mxu1 %v5756_v24  ;;  %v5675_v46 = vld [vmem:[%s8139_s2 + $0x120] ss:$8 sps:$4 sm:$0xff]   ;;  %v5770_v24 = vld [vmem:[%s8142_s4 + $0xc] ss:$16 sps:$4 sm:$0xff]  }
 0x104   :  { %2004 = vmatprep.subr.bf16.mxu0 %v5665_v47  ;;  %v5680_v47 = vld [vmem:[%s8139_s2 + $0x134] ss:$8 sps:$4 sm:$0xff]   ;;  %2295 = vmatprep.subr.bf16.mxu1 %v5761_v15 }
 0x105   :  { %v5809_v15 = vld [vmem:[%s8142_s4 + $0xe4] ss:$16 sps:$4 sm:$0xff]  }
 0x107   :  { %2005 = vmatpush1.bf16.msra.mxu0 %v5663_v48  ;;  %v5678_v48 = vld [vmem:[%s8139_s2 + $0x130] ss:$8 sps:$4 sm:$0xff]   ;;  %2296 = vmatpush1.bf16.msra.mxu1 %v5759_v19 }
 0x108   :  { %2006 = vmatprep.subr.bf16.mxu0 %v5668_v49  ;;  %v5683_v49 = vld [vmem:[%s8139_s2 + $0x144] ss:$8 sps:$4 sm:$0xff]   ;;  %2297 = vmatprep.subr.bf16.mxu1 %v5764_v20  ;;  %v5807_v19 = vld [vmem:[%s8142_s4 + $0xe0] ss:$16 sps:$4 sm:$0xff]  }
 0x109   :  { %v5815_v20 = vld [vmem:[%s8142_s4 + $0x104] ss:$16 sps:$4 sm:$0xff]  }
 0x10b   :  { %2007 = vmatpush1.bf16.msra.mxu0 %v5666_v50  ;;  %v5681_v50 = vld [vmem:[%s8139_s2 + $0x140] ss:$8 sps:$4 sm:$0xff]  }
 0x10c   :  { %2017 = vmatprep.subr.bf16.mxu0 %v5671_v51  ;;  %v5686_v51 = vld [vmem:[%s8139_s2 + $0x154] ss:$8 sps:$4 sm:$0xff]  }
 0x1a1   :  { %v1400_v25 = vpop.f32.mrb[0].mxu0  ;;  %v7066_v26 = vpop.f32.mrb[0].mxu1 }
 0x1a2   :  { %v5274_v27 = vadd.f32 %v1400_v25, %v242_v21  ;;  %v1402_v28 = vpop.f32.mrb[1].mxu0  ;;  %v1566_v29 = vpop.f32.mrb[1].mxu1  ;;  %v5276_v9 = vadd.f32 %v7066_v26, %v250_v6  ;;  %v5762_v21 = vld [vmem:[%s8140_s3 + $0xf0] ss:$8 sps:$4 sm:$0xff]   ;;  %v5776_v26 = vld [vmem:[%s8142_s4 + $0x2c] ss:$16 sps:$4 sm:$0xff]  }
 0x1a3   :  { %v5275_v30 = vadd.f32 %v1402_v28, %v246_v22  ;;  %v5277_v31 = vadd.f32 %v1566_v29, %v254_v23  ;;  %v1404_v32 = vpop.f32.mrb[2].mxu0  ;;  %v1568_v33 = vpop.f32.mrb[2].mxu1  ;;  %2298 = vmatpush1.bf16.msra.mxu1 %v5762_v21  ;;  %v5767_v22 = vld [vmem:[%s8142_s4 + $0x4] ss:$16 sps:$4 sm:$0xff]   ;;  %v5768_v23 = vld [vmem:[%s8142_s4 + $0x8] ss:$16 sps:$4 sm:$0xff]  }
 0x1a4   :  { %v1571_v34 = vmax.f32 %v5274_v27, 0.0  ;;  %v1405_v35 = vpop.f32.mrb[3].mxu0  ;;  %v1569_v36 = vpop.f32.mrb[3].mxu1  ;;  %v1573_v13 = vmax.f32 %v5276_v9, 0.0  ;;  %2719 = vmatprep.subr.bf16.mxu1 %v5767_v22  ;;  %v5774_v25 = vld [vmem:[%s8142_s4 + $0x28] ss:$16 sps:$4 sm:$0xff]  }
 0x1a5   :  { %v1572_v37 = vmax.f32 %v5275_v30, 0.0  ;;  %v1574_v38 = vmax.f32 %v5277_v31, 0.0  ;;  %v5782_v27 = vld [vmem:[%s8142_s4 + $0x4c] ss:$16 sps:$4 sm:$0xff]   ;;  %v5780_v28 = vld [vmem:[%s8142_s4 + $0x48] ss:$16 sps:$4 sm:$0xff]  }
 0x1a6   :  { %v1575_v41 = vpack.c.bf16 %v1571_v34, %v1571_v34  ;;  %v1577_v14 = vpack.c.bf16 %v1573_v13, %v1573_v13  ;;  %v5788_v29 = vld [vmem:[%s8142_s4 + $0x6c] ss:$16 sps:$4 sm:$0xff]   ;;  %v5786_v30 = vld [vmem:[%s8142_s4 + $0x68] ss:$16 sps:$4 sm:$0xff]   ;;  %v5785_v6 = vld [vmem:[%s8142_s4 + $0x64] ss:$16 sps:$4 sm:$0xff]  }
 0x1a7   :  { %v1576_v39 = vpack.c.bf16 %v1572_v37, %v1572_v37  ;;  %v1578_v43 = vpack.c.bf16 %v1574_v38, %v1574_v38  ;;  %v5794_v31 = vld [vmem:[%s8142_s4 + $0x8c] ss:$16 sps:$4 sm:$0xff]   ;;  %v5792_v32 = vld [vmem:[%s8142_s4 + $0x88] ss:$16 sps:$4 sm:$0xff]   ;;  %v5789_v9 = vld [vmem:[%s8142_s4 + $0x80] ss:$16 sps:$4 sm:$0xff]  }
 0x1a8   :  { %v5800_v33 = vld [vmem:[%s8142_s4 + $0xac] ss:$16 sps:$4 sm:$0xff]   ;;  %v5798_v34 = vld [vmem:[%s8142_s4 + $0xa8] ss:$16 sps:$4 sm:$0xff]   ;;  %v5803_v13 = vld [vmem:[%s8142_s4 + $0xc4] ss:$16 sps:$4 sm:$0xff]  }
 0x1a9   :  { %2008 = vmatprep.mubr.bf16.mxu0 %v1576_v39  ;;  %v5806_v35 = vld [vmem:[%s8142_s4 + $0xcc] ss:$16 sps:$4 sm:$0xff]   ;;  %v5804_v36 = vld [vmem:[%s8142_s4 + $0xc8] ss:$16 sps:$4 sm:$0xff]   ;;  %v5813_v21 = vld [vmem:[%s8142_s4 + $0x100] ss:$16 sps:$4 sm:$0xff]  }
 0x1aa   :  { %2009 = vmatmul.mubr.bf16.vlgmr.msra.gmra.mrb[4].mxu0 %v1575_v41  ;;  %v5812_v37 = vld [vmem:[%s8142_s4 + $0xec] ss:$16 sps:$4 sm:$0xff]   ;;  %v5810_v38 = vld [vmem:[%s8142_s4 + $0xe8] ss:$16 sps:$4 sm:$0xff]   ;;  %v5821_v22 = vld [vmem:[%s8142_s4 + $0x124] ss:$16 sps:$4 sm:$0xff]  }
 0x1ab   :  { %2018 = vmatpush1.bf16.msra.mxu0 %v5669_v40  ;;  %2049 = vmatprep.mubr.bf16.mxu0 %v1578_v43  ;;  %v5818_v39 = vld [vmem:[%s8142_s4 + $0x10c] ss:$16 sps:$4 sm:$0xff]   ;;  %v5816_v40 = vld [vmem:[%s8142_s4 + $0x108] ss:$16 sps:$4 sm:$0xff]  }
 0x1ac   :  { %2019 = vmatprep.subr.bf16.mxu0 %v5674_v42  ;;  %v5824_v41 = vld [vmem:[%s8142_s4 + $0x12c] ss:$16 sps:$4 sm:$0xff]   ;;  %v5822_v42 = vld [vmem:[%s8142_s4 + $0x128] ss:$16 sps:$4 sm:$0xff]  }
 0x1ad   :  { %v5830_v43 = vld [vmem:[%s8142_s4 + $0x14c] ss:$16 sps:$4 sm:$0xff]  }
 0x1af   :  { %2020 = vmatpush1.bf16.msra.mxu0 %v5672_v44  ;;  %v5828_v44 = vld [vmem:[%s8142_s4 + $0x148] ss:$16 sps:$4 sm:$0xff]  }
 0x1b0   :  { %2021 = vmatprep.subr.bf16.mxu0 %v5677_v45  ;;  %v5836_v45 = vld [vmem:[%s8142_s4 + $0x16c] ss:$16 sps:$4 sm:$0xff]  }
 0x1b3   :  { %2022 = vmatpush1.bf16.msra.mxu0 %v5675_v46  ;;  %v5834_v46 = vld [vmem:[%s8142_s4 + $0x168] ss:$16 sps:$4 sm:$0xff]  }
 0x1b4   :  { %2023 = vmatprep.subr.bf16.mxu0 %v5680_v47  ;;  %v5842_v47 = vld [vmem:[%s8142_s4 + $0x18c] ss:$16 sps:$4 sm:$0xff]  }
 0x1b7   :  { %2024 = vmatpush1.bf16.msra.mxu0 %v5678_v48  ;;  %v5840_v48 = vld [vmem:[%s8142_s4 + $0x188] ss:$16 sps:$4 sm:$0xff]  }
 0x1b8   :  { %2025 = vmatprep.subr.bf16.mxu0 %v5683_v49  ;;  %v5848_v49 = vld [vmem:[%s8142_s4 + $0x1ac] ss:$16 sps:$4 sm:$0xff]  }
 0x1bb   :  { %2026 = vmatpush1.bf16.msra.mxu0 %v5681_v50  ;;  %v5846_v50 = vld [vmem:[%s8142_s4 + $0x1a8] ss:$16 sps:$4 sm:$0xff]  }
 0x1bc   :  { %2027 = vmatprep.subr.bf16.mxu0 %v5686_v51  ;;  %v4841_v51 = vld [vmem:[%s8141_s6 + $0x1] ss:$8 sm:$0x3] }
 0x1bf   :  { %2028 = vmatpush1.bf16.msra.mxu0 %v5684_v52  ;;  %v1649_v52 = vrot.slane %v4841_v51, %v7043_v16 }
 0x1c0   :  { %2029 = vmatprep.subr.bf16.mxu0 %v5689_v53  ;;  %v1653_v53 = vrot.slane %v4841_v51, %v7046_v17 }
 0x1c3   :  { %2030 = vmatpush1.bf16.msra.mxu0 %v5687_v54 }
 0x1c4   :  { %2031 = vmatprep.subr.bf16.mxu0 %v5692_v55 }
 0x1c7   :  { %2032 = vmatpush1.bf16.msra.mxu0 %v5690_v56 }
 0x1c8   :  { %2033 = vmatprep.subr.bf16.mxu0 %v5695_v57 }
 0x1cb   :  { %2034 = vmatpush1.bf16.msra.mxu0 %v5693_v58 }
 0x1cc   :  { %2035 = vmatprep.subr.bf16.mxu0 %v5698_v59 }
 0x1cf   :  { %2036 = vmatpush1.bf16.msra.mxu0 %v5696_v60 }
 0x1d0   :  { %2037 = vmatprep.subr.bf16.mxu0 %v5701_v61 }
 0x1d3   :  { %2038 = vmatpush1.bf16.msra.mxu0 %v5699_v62 }
 0x1d4   :  { %2039 = vmatprep.subr.bf16.mxu0 %v5704_v63  ;;  %v5765_v63 = vld [vmem:[%s8142_s4] ss:$16 sps:$4 sm:$0xff]  }
 0x1d7   :  { %2040 = vmatpush1.bf16.msra.mxu0 %v5702_v0 }
 0x1d8   :  { %2041 = vmatprep.subr.bf16.mxu0 %v5707_v1  ;;  %v5773_v1 = vld [vmem:[%s8142_s4 + $0x24] ss:$16 sps:$4 sm:$0xff]  }
 0x1db   :  { %2042 = vmatpush1.bf16.msra.mxu0 %v5705_v2  ;;  %v5771_v2 = vld [vmem:[%s8142_s4 + $0x20] ss:$16 sps:$4 sm:$0xff]  }
 0x1dc   :  { %2043 = vmatprep.subr.bf16.mxu0 %v5710_v4  ;;  %v5779_v4 = vld [vmem:[%s8142_s4 + $0x44] ss:$16 sps:$4 sm:$0xff]  }
 0x1df   :  { %2044 = vmatpush1.bf16.msra.mxu0 %v5708_v5  ;;  %v5777_v5 = vld [vmem:[%s8142_s4 + $0x40] ss:$16 sps:$4 sm:$0xff]  }
 0x1e0   :  { %2045 = vmatprep.subr.bf16.mxu0 %v5713_v7  ;;  %v5783_v7 = vld [vmem:[%s8142_s4 + $0x60] ss:$16 sps:$4 sm:$0xff]  }
 0x1e3   :  { %2046 = vmatpush1.bf16.msra.mxu0 %v5711_v8  ;;  %v5791_v8 = vld [vmem:[%s8142_s4 + $0x84] ss:$16 sps:$4 sm:$0xff]  }
 0x1e4   :  { %2047 = vmatprep.subr.bf16.mxu0 %v5716_v10  ;;  %v5797_v10 = vld [vmem:[%s8142_s4 + $0xa4] ss:$16 sps:$4 sm:$0xff]  }
 0x1e7   :  { %2048 = vmatpush1.bf16.msra.mxu0 %v5714_v11  ;;  %v5795_v11 = vld [vmem:[%s8142_s4 + $0xa0] ss:$16 sps:$4 sm:$0xff]  }
 0x1e8   :  { %2760 = vmatprep.subr.bf16.mxu0 %v5770_v24  ;;  %v5827_v24 = vld [vmem:[%s8142_s4 + $0x144] ss:$16 sps:$4 sm:$0xff]  }
 0x1ea   :  { %2050 = vmatmul.mubr.bf16.vlgmr.msra.gmra.mrb[4].mxu0 %v1577_v14  ;;  %v5801_v14 = vld [vmem:[%s8142_s4 + $0xc0] ss:$16 sps:$4 sm:$0xff]  }
 0x1eb   :  { %2761 = vmatpush1.bf16.msra.mxu0 %v5768_v23  ;;  %v5819_v23 = vld [vmem:[%s8142_s4 + $0x120] ss:$16 sps:$4 sm:$0xff]  }
 0x1ec   :  { %2762 = vmatprep.subr.bf16.mxu0 %v5776_v26  ;;  %v5833_v26 = vld [vmem:[%s8142_s4 + $0x164] ss:$16 sps:$4 sm:$0xff]  }
 0x1ef   :  { %2763 = vmatpush1.bf16.msra.mxu0 %v5774_v25  ;;  %v5825_v25 = vld [vmem:[%s8142_s4 + $0x140] ss:$16 sps:$4 sm:$0xff]  }
 0x1f0   :  { %2764 = vmatprep.subr.bf16.mxu0 %v5782_v27  ;;  %v5831_v27 = vld [vmem:[%s8142_s4 + $0x160] ss:$16 sps:$4 sm:$0xff]  }
 0x1f3   :  { %2765 = vmatpush1.bf16.msra.mxu0 %v5780_v28  ;;  %v5839_v28 = vld [vmem:[%s8142_s4 + $0x184] ss:$16 sps:$4 sm:$0xff]  }
 0x1f4   :  { %2766 = vmatprep.subr.bf16.mxu0 %v5788_v29  ;;  %v5837_v29 = vld [vmem:[%s8142_s4 + $0x180] ss:$16 sps:$4 sm:$0xff]  }
 0x1f7   :  { %2767 = vmatpush1.bf16.msra.mxu0 %v5786_v30  ;;  %v5845_v30 = vld [vmem:[%s8142_s4 + $0x1a4] ss:$16 sps:$4 sm:$0xff]  }
 0x1f8   :  { %2768 = vmatprep.subr.bf16.mxu0 %v5794_v31  ;;  %v5843_v31 = vld [vmem:[%s8142_s4 + $0x1a0] ss:$16 sps:$4 sm:$0xff]  }
 0x1fb   :  { %2769 = vmatpush1.bf16.msra.mxu0 %v5792_v32  ;;  %v5851_v32 = vld [vmem:[%s8142_s4 + $0x1c4] ss:$16 sps:$4 sm:$0xff]  }
 0x1fc   :  { %2770 = vmatprep.subr.bf16.mxu0 %v5800_v33  ;;  %v5854_v33 = vld [vmem:[%s8142_s4 + $0x1cc] ss:$16 sps:$4 sm:$0xff]  }
 0x1ff   :  { %2771 = vmatpush1.bf16.msra.mxu0 %v5798_v34  ;;  %v5849_v34 = vld [vmem:[%s8142_s4 + $0x1c0] ss:$16 sps:$4 sm:$0xff]  }
 0x200   :  { %2772 = vmatprep.subr.bf16.mxu0 %v5806_v35  ;;  %v5852_v35 = vld [vmem:[%s8142_s4 + $0x1c8] ss:$16 sps:$4 sm:$0xff]  }
 0x203   :  { %2773 = vmatpush1.bf16.msra.mxu0 %v5804_v36  ;;  %v5857_v36 = vld [vmem:[%s8142_s4 + $0x1e4] ss:$16 sps:$4 sm:$0xff]  }
 0x204   :  { %2774 = vmatprep.subr.bf16.mxu0 %v5812_v37  ;;  %v5860_v37 = vld [vmem:[%s8142_s4 + $0x1ec] ss:$16 sps:$4 sm:$0xff]  }
 0x207   :  { %2775 = vmatpush1.bf16.msra.mxu0 %v5810_v38  ;;  %v5855_v38 = vld [vmem:[%s8142_s4 + $0x1e0] ss:$16 sps:$4 sm:$0xff]  }
 0x208   :  { %2776 = vmatprep.subr.bf16.mxu0 %v5818_v39  ;;  %v5858_v39 = vld [vmem:[%s8142_s4 + $0x1e8] ss:$16 sps:$4 sm:$0xff]  }
 0x20b   :  { %2777 = vmatpush1.bf16.msra.mxu0 %v5816_v40  ;;  %v5863_v40 = vld [vmem:[%s8143_s5 + $0x4] ss:$28 sps:$4 sm:$0xff]  }
 0x20c   :  { %2778 = vmatprep.subr.bf16.mxu0 %v5824_v41  ;;  %v5866_v41 = vld [vmem:[%s8143_s5 + $0xc] ss:$28 sps:$4 sm:$0xff]  }
 0x20f   :  { %2779 = vmatpush1.bf16.msra.mxu0 %v5822_v42  ;;  %v4906_v42 = vld [vmem:[%s8141_s6 + $0x2] ss:$8 sm:$0x3] }
 0x210   :  { %2780 = vmatprep.subr.bf16.mxu0 %v5830_v43  ;;  %v2100_v43 = vrot.slane %v4906_v42, %v7043_v16 }
 0x213   :  { %2781 = vmatpush1.bf16.msra.mxu0 %v5828_v44  ;;  %v2104_v44 = vrot.slane %v4906_v42, %v7046_v17  ;;  %v5935_v42 = vld [vmem:[%s8143_s5 + $0x2a4] ss:$28 sps:$4 sm:$0xff]  }
 0x214   :  { %2782 = vmatprep.subr.bf16.mxu0 %v5836_v45 }
 0x217   :  { %2783 = vmatpush1.bf16.msra.mxu0 %v5834_v46 }
 0x218   :  { %2784 = vmatprep.subr.bf16.mxu0 %v5842_v47 }
 0x21b   :  { %2785 = vmatpush1.bf16.msra.mxu0 %v5840_v48 }
 0x21c   :  { %2786 = vmatprep.subr.bf16.mxu0 %v5848_v49 }
 0x21f   :  { %2787 = vmatpush1.bf16.msra.mxu0 %v5846_v50 }
 0x220   :  { %2788 = vmatprep.subr.bf16.mxu0 %v5854_v33  ;;  %v5918_v33 = vld [vmem:[%s8143_s5 + $0x200] ss:$28 sps:$4 sm:$0xff]  }
 0x223   :  { %2789 = vmatpush1.bf16.msra.mxu0 %v5852_v35  ;;  %v5926_v35 = vld [vmem:[%s8143_s5 + $0x23c] ss:$28 sps:$4 sm:$0xff]  }
 0x224   :  { %2790 = vmatprep.subr.bf16.mxu0 %v5860_v37  ;;  %v5924_v37 = vld [vmem:[%s8143_s5 + $0x238] ss:$28 sps:$4 sm:$0xff]  }
 0x227   :  { %2791 = vmatpush1.bf16.msra.mxu0 %v5858_v39  ;;  %v5932_v39 = vld [vmem:[%s8143_s5 + $0x274] ss:$28 sps:$4 sm:$0xff]  }
 0x228   :  { %4339 = vmatprep.subr.bf16.mxu0 %v5866_v41  ;;  %v5930_v41 = vld [vmem:[%s8143_s5 + $0x270] ss:$28 sps:$4 sm:$0xff]  }
 0x2bd   :  { %v2051_v54 = vpop.f32.mrb[4].mxu0 }
 0x2be   :  { %v5278_v55 = vadd.f32 %v2051_v54, %v1649_v52  ;;  %v2053_v56 = vpop.f32.mrb[5].mxu0  ;;  %v5861_v54 = vld [vmem:[%s8143_s5] ss:$28 sps:$4 sm:$0xff]  }
 0x2bf   :  { %v5279_v57 = vadd.f32 %v2053_v56, %v1653_v53  ;;  %v2055_v58 = vpop.f32.mrb[6].mxu0 }
 0x2c0   :  { %v2058_v59 = vmax.f32 %v5278_v55, 0.0  ;;  %v2056_v60 = vpop.f32.mrb[7].mxu0  ;;  %v5864_v55 = vld [vmem:[%s8143_s5 + $0x8] ss:$28 sps:$4 sm:$0xff]  }
 0x2c1   :  { %v2059_v61 = vmax.f32 %v5279_v57, 0.0  ;;  %v5869_v57 = vld [vmem:[%s8143_s5 + $0x3c] ss:$28 sps:$4 sm:$0xff]   ;;  %v5872_v58 = vld [vmem:[%s8143_s5 + $0x44] ss:$28 sps:$4 sm:$0xff]  }
 0x2c2   :  { %v2060_v0 = vpack.c.bf16 %v2058_v59, %v2058_v59  ;;  %v5867_v59 = vld [vmem:[%s8143_s5 + $0x38] ss:$28 sps:$4 sm:$0xff]   ;;  %v5870_v60 = vld [vmem:[%s8143_s5 + $0x40] ss:$28 sps:$4 sm:$0xff]  }
 0x2c3   :  { %v2061_v62 = vpack.c.bf16 %v2059_v61, %v2059_v61  ;;  %v5875_v61 = vld [vmem:[%s8143_s5 + $0x74] ss:$28 sps:$4 sm:$0xff]  }
 0x2c5   :  { %2299 = vmatprep.mubr.bf16.mxu1 %v2061_v62  ;;  %v5878_v62 = vld [vmem:[%s8143_s5 + $0x7c] ss:$28 sps:$4 sm:$0xff]  }
 0x2c6   :  { %2300 = vmatmul.mubr.bf16.vlgmr.msra.gmra.mrb[4].mxu1 %v2060_v0  ;;  %v5876_v0 = vld [vmem:[%s8143_s5 + $0x78] ss:$28 sps:$4 sm:$0xff]  }
 0x2c7   :  { %2720 = vmatpush1.bf16.msra.mxu1 %v5765_v63  ;;  %v5873_v63 = vld [vmem:[%s8143_s5 + $0x70] ss:$28 sps:$4 sm:$0xff]  }
 0x2c8   :  { %2721 = vmatprep.subr.bf16.mxu1 %v5773_v1  ;;  %v5881_v1 = vld [vmem:[%s8143_s5 + $0xac] ss:$28 sps:$4 sm:$0xff]  }
 0x2cb   :  { %2722 = vmatpush1.bf16.msra.mxu1 %v5771_v2  ;;  %v5884_v2 = vld [vmem:[%s8143_s5 + $0xb4] ss:$28 sps:$4 sm:$0xff]  }
 0x2cc   :  { %2723 = vmatprep.subr.bf16.mxu1 %v5779_v4  ;;  %v5879_v4 = vld [vmem:[%s8143_s5 + $0xa8] ss:$28 sps:$4 sm:$0xff]  }
 0x2cf   :  { %2724 = vmatpush1.bf16.msra.mxu1 %v5777_v5  ;;  %v5882_v5 = vld [vmem:[%s8143_s5 + $0xb0] ss:$28 sps:$4 sm:$0xff]  }
 0x2d0   :  { %2725 = vmatprep.subr.bf16.mxu1 %v5785_v6  ;;  %v5887_v6 = vld [vmem:[%s8143_s5 + $0xe4] ss:$28 sps:$4 sm:$0xff]  }
 0x2d3   :  { %2726 = vmatpush1.bf16.msra.mxu1 %v5783_v7  ;;  %v5890_v7 = vld [vmem:[%s8143_s5 + $0xec] ss:$28 sps:$4 sm:$0xff]  }
 0x2d4   :  { %2727 = vmatprep.subr.bf16.mxu1 %v5791_v8  ;;  %v5885_v8 = vld [vmem:[%s8143_s5 + $0xe0] ss:$28 sps:$4 sm:$0xff]  }
 0x2d7   :  { %2728 = vmatpush1.bf16.msra.mxu1 %v5789_v9  ;;  %v5888_v9 = vld [vmem:[%s8143_s5 + $0xe8] ss:$28 sps:$4 sm:$0xff]  }
 0x2d8   :  { %2729 = vmatprep.subr.bf16.mxu1 %v5797_v10  ;;  %v5893_v10 = vld [vmem:[%s8143_s5 + $0x11c] ss:$28 sps:$4 sm:$0xff]  }
 0x2db   :  { %2730 = vmatpush1.bf16.msra.mxu1 %v5795_v11  ;;  %v5896_v11 = vld [vmem:[%s8143_s5 + $0x124] ss:$28 sps:$4 sm:$0xff]  }
 0x2dc   :  { %2731 = vmatprep.subr.bf16.mxu1 %v5803_v13  ;;  %v5891_v13 = vld [vmem:[%s8143_s5 + $0x118] ss:$28 sps:$4 sm:$0xff]  }
 0x2df   :  { %2732 = vmatpush1.bf16.msra.mxu1 %v5801_v14  ;;  %v5894_v14 = vld [vmem:[%s8143_s5 + $0x120] ss:$28 sps:$4 sm:$0xff]  }
 0x2e0   :  { %2733 = vmatprep.subr.bf16.mxu1 %v5809_v15  ;;  %v5899_v15 = vld [vmem:[%s8143_s5 + $0x154] ss:$28 sps:$4 sm:$0xff]  }
 0x2e3   :  { %2734 = vmatpush1.bf16.msra.mxu1 %v5807_v19  ;;  %v5902_v19 = vld [vmem:[%s8143_s5 + $0x15c] ss:$28 sps:$4 sm:$0xff]  }
 0x2e4   :  { %2735 = vmatprep.subr.bf16.mxu1 %v5815_v20  ;;  %v5897_v20 = vld [vmem:[%s8143_s5 + $0x150] ss:$28 sps:$4 sm:$0xff]  }
 0x2e7   :  { %2736 = vmatpush1.bf16.msra.mxu1 %v5813_v21  ;;  %v5900_v21 = vld [vmem:[%s8143_s5 + $0x158] ss:$28 sps:$4 sm:$0xff]  }
 0x2e8   :  { %2737 = vmatprep.subr.bf16.mxu1 %v5821_v22  ;;  %v5905_v22 = vld [vmem:[%s8143_s5 + $0x18c] ss:$28 sps:$4 sm:$0xff]  }
 0x2eb   :  { %2738 = vmatpush1.bf16.msra.mxu1 %v5819_v23  ;;  %v5908_v23 = vld [vmem:[%s8143_s5 + $0x194] ss:$28 sps:$4 sm:$0xff]  }
 0x2ec   :  { %2739 = vmatprep.subr.bf16.mxu1 %v5827_v24  ;;  %v5903_v24 = vld [vmem:[%s8143_s5 + $0x188] ss:$28 sps:$4 sm:$0xff]  }
 0x2ef   :  { %2740 = vmatpush1.bf16.msra.mxu1 %v5825_v25  ;;  %v5906_v25 = vld [vmem:[%s8143_s5 + $0x190] ss:$28 sps:$4 sm:$0xff]  }
 0x2f0   :  { %2741 = vmatprep.subr.bf16.mxu1 %v5833_v26  ;;  %v5911_v26 = vld [vmem:[%s8143_s5 + $0x1c4] ss:$28 sps:$4 sm:$0xff]  }
 0x2f3   :  { %2742 = vmatpush1.bf16.msra.mxu1 %v5831_v27  ;;  %v5914_v27 = vld [vmem:[%s8143_s5 + $0x1cc] ss:$28 sps:$4 sm:$0xff]  }
 0x2f4   :  { %2743 = vmatprep.subr.bf16.mxu1 %v5839_v28  ;;  %v5909_v28 = vld [vmem:[%s8143_s5 + $0x1c0] ss:$28 sps:$4 sm:$0xff]  }
 0x2f7   :  { %2744 = vmatpush1.bf16.msra.mxu1 %v5837_v29  ;;  %v5912_v29 = vld [vmem:[%s8143_s5 + $0x1c8] ss:$28 sps:$4 sm:$0xff]  }
 0x2f8   :  { %2745 = vmatprep.subr.bf16.mxu1 %v5845_v30  ;;  %v5917_v30 = vld [vmem:[%s8143_s5 + $0x1fc] ss:$28 sps:$4 sm:$0xff]  }
 0x2fb   :  { %2746 = vmatpush1.bf16.msra.mxu1 %v5843_v31  ;;  %v5920_v31 = vld [vmem:[%s8143_s5 + $0x204] ss:$28 sps:$4 sm:$0xff]  }
 0x2fc   :  { %2747 = vmatprep.subr.bf16.mxu1 %v5851_v32  ;;  %v5915_v32 = vld [vmem:[%s8143_s5 + $0x1f8] ss:$28 sps:$4 sm:$0xff]  }
 0x2ff   :  { %2748 = vmatpush1.bf16.msra.mxu1 %v5849_v34  ;;  %v5923_v34 = vld [vmem:[%s8143_s5 + $0x234] ss:$28 sps:$4 sm:$0xff]  }
 0x300   :  { %2749 = vmatprep.subr.bf16.mxu1 %v5857_v36  ;;  %v5921_v36 = vld [vmem:[%s8143_s5 + $0x230] ss:$28 sps:$4 sm:$0xff]  }
 0x303   :  { %2750 = vmatpush1.bf16.msra.mxu1 %v5855_v38  ;;  %v5929_v38 = vld [vmem:[%s8143_s5 + $0x26c] ss:$28 sps:$4 sm:$0xff]  }
 0x304   :  { %4257 = vmatprep.subr.bf16.mxu1 %v5863_v40  ;;  %v5927_v40 = vld [vmem:[%s8143_s5 + $0x268] ss:$28 sps:$4 sm:$0xff]  }
 0x399   :  { %v2301_v45 = vpop.f32.mrb[4].mxu1 }
 0x39a   :  { %v2302_v46 = vadd.f32 %v2301_v45, %v2100_v43  ;;  %v2303_v47 = vpop.f32.mrb[5].mxu1  ;;  %v5938_v43 = vld [vmem:[%s8143_s5 + $0x2ac] ss:$28 sps:$4 sm:$0xff]  }
 0x39b   :  { %v2304_v48 = vadd.f32 %v2303_v47, %v2104_v44  ;;  %v2305_v49 = vpop.f32.mrb[6].mxu1  ;;  %v5933_v44 = vld [vmem:[%s8143_s5 + $0x2a0] ss:$28 sps:$4 sm:$0xff]   ;;  %v5936_v45 = vld [vmem:[%s8143_s5 + $0x2a8] ss:$28 sps:$4 sm:$0xff]  }
 0x39c   :  { %v2308_v50 = vmax.f32 %v2302_v46, 0.0  ;;  %v2306_v51 = vpop.f32.mrb[7].mxu1  ;;  %v5941_v46 = vld [vmem:[%s8143_s5 + $0x2dc] ss:$28 sps:$4 sm:$0xff]   ;;  %v5944_v47 = vld [vmem:[%s8143_s5 + $0x2e4] ss:$28 sps:$4 sm:$0xff]  }
 0x39d   :  { %v2309_v52 = vmax.f32 %v2304_v48, 0.0  ;;  %v5939_v48 = vld [vmem:[%s8143_s5 + $0x2d8] ss:$28 sps:$4 sm:$0xff]   ;;  %v5942_v49 = vld [vmem:[%s8143_s5 + $0x2e0] ss:$28 sps:$4 sm:$0xff]  }
 0x39e   :  { %v2310_v56 = vpack.c.bf16 %v2308_v50, %v2308_v50  ;;  %v5947_v50 = vld [vmem:[%s8143_s5 + $0x314] ss:$28 sps:$4 sm:$0xff]   ;;  %v5950_v51 = vld [vmem:[%s8143_s5 + $0x31c] ss:$28 sps:$4 sm:$0xff]  }
 0x39f   :  { %v2311_v53 = vpack.c.bf16 %v2309_v52, %v2309_v52  ;;  %v5945_v52 = vld [vmem:[%s8143_s5 + $0x310] ss:$28 sps:$4 sm:$0xff]  }
 0x3a1   :  { %2751 = vmatprep.mubr.bf16.mxu1 %v2311_v53  ;;  %2792 = vmatprep.mubr.bf16.mxu0 %v2311_v53  ;;  %v5948_v53 = vld [vmem:[%s8143_s5 + $0x318] ss:$28 sps:$4 sm:$0xff]  }
 0x3a2   :  { %2752 = vmatmul.mubr.bf16.vlgmr.msra.gmra.mrb[8].mxu1 %v2310_v56  ;;  %2793 = vmatmul.mubr.bf16.vlgmr.msra.gmra.mrb[8].mxu0 %v2310_v56  ;;  %v5951_v56 = vld [vmem:[%s8143_s5 + $0x348] ss:$28 sps:$4 sm:$0xff]  }
 0x3a3   :  { %4258 = vmatpush1.bf16.msra.mxu1 %v5861_v54  ;;  %4340 = vmatpush1.bf16.msra.mxu0 %v5864_v55  ;;  %v5953_v54 = vld [vmem:[%s8143_s5 + $0x34c] ss:$28 sps:$4 sm:$0xff]   ;;  %v5956_v55 = vld [vmem:[%s8143_s5 + $0x354] ss:$28 sps:$4 sm:$0xff]  }
 0x3a4   :  { %4259 = vmatprep.subr.bf16.mxu1 %v5869_v57  ;;  %4341 = vmatprep.subr.bf16.mxu0 %v5872_v58  ;;  %v5954_v57 = vld [vmem:[%s8143_s5 + $0x350] ss:$28 sps:$4 sm:$0xff]   ;;  %v5959_v58 = vld [vmem:[%s8143_s5 + $0x384] ss:$28 sps:$4 sm:$0xff]  }
 0x3a7   :  { %4260 = vmatpush1.bf16.msra.mxu1 %v5867_v59  ;;  %4342 = vmatpush1.bf16.msra.mxu0 %v5870_v60  ;;  %v5962_v59 = vld [vmem:[%s8143_s5 + $0x38c] ss:$28 sps:$4 sm:$0xff]  }
 0x3a8   :  { %4261 = vmatprep.subr.bf16.mxu1 %v5875_v61  ;;  %4343 = vmatprep.subr.bf16.mxu0 %v5878_v62  ;;  %v7582_v60 = vld [vmem:[%s8141_s6 + $0x3] ss:$8 sm:$0xf] }
 0x3a9   :  { %v2382_v61 = vrot.slane %v7582_v60, %v7043_v16  ;;  %v2386_v62 = vrot.slane %v7582_v60, %v7046_v17 }
 0x3ab   :  { %4262 = vmatpush1.bf16.msra.mxu1 %v5873_v63  ;;  %4344 = vmatpush1.bf16.msra.mxu0 %v5876_v0  ;;  %v2394_v63 = vrot.slane %v7582_v60, %v7049_v18 }
 0x3ac   :  { %4263 = vmatprep.subr.bf16.mxu1 %v5881_v1  ;;  %4345 = vmatprep.subr.bf16.mxu0 %v5884_v2 }
 0x3af   :  { %4264 = vmatpush1.bf16.msra.mxu1 %v5879_v4  ;;  %4346 = vmatpush1.bf16.msra.mxu0 %v5882_v5 }
 0x3b0   :  { %4265 = vmatprep.subr.bf16.mxu1 %v5887_v6  ;;  %4347 = vmatprep.subr.bf16.mxu0 %v5890_v7 }
 0x3b3   :  { %4266 = vmatpush1.bf16.msra.mxu1 %v5885_v8  ;;  %4348 = vmatpush1.bf16.msra.mxu0 %v5888_v9 }
 0x3b4   :  { %4267 = vmatprep.subr.bf16.mxu1 %v5893_v10  ;;  %4349 = vmatprep.subr.bf16.mxu0 %v5896_v11 }
 0x3b7   :  { %4268 = vmatpush1.bf16.msra.mxu1 %v5891_v13  ;;  %4350 = vmatpush1.bf16.msra.mxu0 %v5894_v14 }
 0x3b8   :  { %4269 = vmatprep.subr.bf16.mxu1 %v5899_v15  ;;  %4351 = vmatprep.subr.bf16.mxu0 %v5902_v19 }
 0x3bb   :  { %4270 = vmatpush1.bf16.msra.mxu1 %v5897_v20  ;;  %4352 = vmatpush1.bf16.msra.mxu0 %v5900_v21  ;;  %v5957_v20 = vld [vmem:[%s8143_s5 + $0x380] ss:$28 sps:$4 sm:$0xff]   ;;  %v5960_v21 = vld [vmem:[%s8143_s5 + $0x388] ss:$28 sps:$4 sm:$0xff]  }
 0x3bc   :  { %4271 = vmatprep.subr.bf16.mxu1 %v5905_v22  ;;  %4353 = vmatprep.subr.bf16.mxu0 %v5908_v23  ;;  %v5965_v23 = vld [vmem:[%s8143_s5 + $0x3bc] ss:$28 sps:$4 sm:$0xff]  }
 0x3bf   :  { %4272 = vmatpush1.bf16.msra.mxu1 %v5903_v24  ;;  %4354 = vmatpush1.bf16.msra.mxu0 %v5906_v25  ;;  %v5968_v24 = vld [vmem:[%s8143_s5 + $0x3c4] ss:$28 sps:$4 sm:$0xff]  }
 0x3c0   :  { %4273 = vmatprep.subr.bf16.mxu1 %v5911_v26  ;;  %4355 = vmatprep.subr.bf16.mxu0 %v5914_v27  ;;  %v5963_v26 = vld [vmem:[%s8143_s5 + $0x3b8] ss:$28 sps:$4 sm:$0xff]   ;;  %v5966_v27 = vld [vmem:[%s8143_s5 + $0x3c0] ss:$28 sps:$4 sm:$0xff]  }
 0x3c3   :  { %4274 = vmatpush1.bf16.msra.mxu1 %v5909_v28  ;;  %4356 = vmatpush1.bf16.msra.mxu0 %v5912_v29  ;;  %v5971_v28 = vld [vmem:[%s8143_s5 + $0x3f4] ss:$28 sps:$4 sm:$0xff]   ;;  %v5974_v29 = vld [vmem:[%s8143_s5 + $0x3fc] ss:$28 sps:$4 sm:$0xff]  }
 0x3c4   :  { %4275 = vmatprep.subr.bf16.mxu1 %v5917_v30  ;;  %4357 = vmatprep.subr.bf16.mxu0 %v5920_v31  ;;  %v5969_v30 = vld [vmem:[%s8143_s5 + $0x3f0] ss:$28 sps:$4 sm:$0xff]   ;;  %v5972_v31 = vld [vmem:[%s8143_s5 + $0x3f8] ss:$28 sps:$4 sm:$0xff]  }
 0x3c7   :  { %4276 = vmatpush1.bf16.msra.mxu1 %v5915_v32  ;;  %4358 = vmatpush1.bf16.msra.mxu0 %v5918_v33  ;;  %v5977_v32 = vld [vmem:[%s8143_s5 + $0x42c] ss:$28 sps:$4 sm:$0xff]   ;;  %v5980_v33 = vld [vmem:[%s8143_s5 + $0x434] ss:$28 sps:$4 sm:$0xff]  }
 0x3c8   :  { %4277 = vmatprep.subr.bf16.mxu1 %v5923_v34  ;;  %4359 = vmatprep.subr.bf16.mxu0 %v5926_v35  ;;  %v5975_v34 = vld [vmem:[%s8143_s5 + $0x428] ss:$28 sps:$4 sm:$0xff]   ;;  %v5978_v35 = vld [vmem:[%s8143_s5 + $0x430] ss:$28 sps:$4 sm:$0xff]  }
 0x3cb   :  { %4278 = vmatpush1.bf16.msra.mxu1 %v5921_v36  ;;  %4360 = vmatpush1.bf16.msra.mxu0 %v5924_v37  ;;  %v5983_v36 = vld [vmem:[%s8143_s5 + $0x464] ss:$28 sps:$4 sm:$0xff]   ;;  %v5986_v37 = vld [vmem:[%s8143_s5 + $0x46c] ss:$28 sps:$4 sm:$0xff]  }
 0x3cc   :  { %4279 = vmatprep.subr.bf16.mxu1 %v5929_v38  ;;  %4361 = vmatprep.subr.bf16.mxu0 %v5932_v39  ;;  %v5981_v38 = vld [vmem:[%s8143_s5 + $0x460] ss:$28 sps:$4 sm:$0xff]   ;;  %v5984_v39 = vld [vmem:[%s8143_s5 + $0x468] ss:$28 sps:$4 sm:$0xff]  }
 0x3cf   :  { %4280 = vmatpush1.bf16.msra.mxu1 %v5927_v40  ;;  %4362 = vmatpush1.bf16.msra.mxu0 %v5930_v41  ;;  %v5989_v40 = vld [vmem:[%s8143_s5 + $0x49c] ss:$28 sps:$4 sm:$0xff]   ;;  %v5992_v41 = vld [vmem:[%s8143_s5 + $0x4a4] ss:$28 sps:$4 sm:$0xff]  }
 0x3d0   :  { %4281 = vmatprep.subr.bf16.mxu1 %v5935_v42  ;;  %4363 = vmatprep.subr.bf16.mxu0 %v5938_v43  ;;  %v5987_v42 = vld [vmem:[%s8143_s5 + $0x498] ss:$28 sps:$4 sm:$0xff]   ;;  %v5990_v43 = vld [vmem:[%s8143_s5 + $0x4a0] ss:$28 sps:$4 sm:$0xff]  }
 0x3d3   :  { %4282 = vmatpush1.bf16.msra.mxu1 %v5933_v44  ;;  %4364 = vmatpush1.bf16.msra.mxu0 %v5936_v45  ;;  %v5995_v44 = vld [vmem:[%s8143_s5 + $0x4d4] ss:$28 sps:$4 sm:$0xff]   ;;  %v5998_v45 = vld [vmem:[%s8143_s5 + $0x4dc] ss:$28 sps:$4 sm:$0xff]  }
 0x3d4   :  { %4283 = vmatprep.subr.bf16.mxu1 %v5941_v46  ;;  %4365 = vmatprep.subr.bf16.mxu0 %v5944_v47  ;;  %v5993_v46 = vld [vmem:[%s8143_s5 + $0x4d0] ss:$28 sps:$4 sm:$0xff]   ;;  %v5996_v47 = vld [vmem:[%s8143_s5 + $0x4d8] ss:$28 sps:$4 sm:$0xff]  }
 0x3d7   :  { %4284 = vmatpush1.bf16.msra.mxu1 %v5939_v48  ;;  %4366 = vmatpush1.bf16.msra.mxu0 %v5942_v49  ;;  %v6001_v48 = vld [vmem:[%s8143_s5 + $0x50c] ss:$28 sps:$4 sm:$0xff]   ;;  %v6004_v49 = vld [vmem:[%s8143_s5 + $0x514] ss:$28 sps:$4 sm:$0xff]  }
 0x3d8   :  { %4285 = vmatprep.subr.bf16.mxu1 %v5947_v50  ;;  %4367 = vmatprep.subr.bf16.mxu0 %v5950_v51  ;;  %v5999_v50 = vld [vmem:[%s8143_s5 + $0x508] ss:$28 sps:$4 sm:$0xff]   ;;  %v6002_v51 = vld [vmem:[%s8143_s5 + $0x510] ss:$28 sps:$4 sm:$0xff]  }
 0x3db   :  { %4286 = vmatpush1.bf16.msra.mxu1 %v5945_v52  ;;  %4368 = vmatpush1.bf16.msra.mxu0 %v5948_v53  ;;  %v6007_v52 = vld [vmem:[%s8143_s5 + $0x544] ss:$28 sps:$4 sm:$0xff]   ;;  %v6010_v53 = vld [vmem:[%s8143_s5 + $0x54c] ss:$28 sps:$4 sm:$0xff]  }
 0x3dc   :  { %4287 = vmatprep.subr.bf16.mxu1 %v5953_v54  ;;  %4369 = vmatprep.subr.bf16.mxu0 %v5956_v55  ;;  %v6005_v54 = vld [vmem:[%s8143_s5 + $0x540] ss:$28 sps:$4 sm:$0xff]   ;;  %v6008_v55 = vld [vmem:[%s8143_s5 + $0x548] ss:$28 sps:$4 sm:$0xff]  }
 0x3df   :  { %4288 = vmatpush1.bf16.msra.mxu1 %v5951_v56  ;;  %4370 = vmatpush1.bf16.msra.mxu0 %v5954_v57  ;;  %v6013_v56 = vld [vmem:[%s8143_s5 + $0x57c] ss:$28 sps:$4 sm:$0xff]   ;;  %v6016_v57 = vld [vmem:[%s8143_s5 + $0x584] ss:$28 sps:$4 sm:$0xff]  }
 0x3e0   :  { %4298 = vmatprep.subr.bf16.mxu1 %v5959_v58  ;;  %4380 = vmatprep.subr.bf16.mxu0 %v5962_v59  ;;  %v6011_v58 = vld [vmem:[%s8143_s5 + $0x578] ss:$28 sps:$4 sm:$0xff]   ;;  %v6014_v59 = vld [vmem:[%s8143_s5 + $0x580] ss:$28 sps:$4 sm:$0xff]  }
 0x475   :  { %v2753_v0 = vpop.f32.mrb[8].mxu1  ;;  %v7590_v1 = vpop.f32.mrb[8].mxu0 }
 0x476   :  { %v2754_v2 = vadd.f32 %v2753_v0, %v2382_v61  ;;  %v2755_v4 = vpop.f32.mrb[9].mxu1  ;;  %v2796_v5 = vpop.f32.mrb[9].mxu0  ;;  %v6019_v61 = vld [vmem:[%s8143_s5 + $0x5b4] ss:$28 sps:$4 sm:$0xff]  }
 0x477   :  { %v2756_v6 = vadd.f32 %v2755_v4, %v2386_v62  ;;  %v2797_v7 = vadd.f32 %v2796_v5, %v2394_v63  ;;  %v2757_v8 = vpop.f32.mrb[10].mxu1  ;;  %v2798_v9 = vpop.f32.mrb[10].mxu0  ;;  %v6022_v62 = vld [vmem:[%s8143_s5 + $0x5bc] ss:$28 sps:$4 sm:$0xff]   ;;  %v6017_v63 = vld [vmem:[%s8143_s5 + $0x5b0] ss:$28 sps:$4 sm:$0xff]  }
 0x478   :  { %v2801_v10 = vmax.f32 %v2754_v2, 0.0  ;;  %v2758_v11 = vpop.f32.mrb[11].mxu1  ;;  %v2799_v13 = vpop.f32.mrb[11].mxu0  ;;  %v6020_v0 = vld [vmem:[%s8143_s5 + $0x5b8] ss:$28 sps:$4 sm:$0xff]  }
 0x479   :  { %v2802_v14 = vmax.f32 %v2756_v6, 0.0  ;;  %v2804_v15 = vmax.f32 %v2797_v7, 0.0  ;;  %v6025_v2 = vld [vmem:[%s8143_s5 + $0x5ec] ss:$28 sps:$4 sm:$0xff]   ;;  %v6028_v4 = vld [vmem:[%s8143_s5 + $0x5f4] ss:$28 sps:$4 sm:$0xff]  }
 0x47a   :  { %v7600_v22 = vpack.c.bf16 %v2801_v10, %v2801_v10  ;;  %v6023_v5 = vld [vmem:[%s8143_s5 + $0x5e8] ss:$28 sps:$4 sm:$0xff]   ;;  %v6026_v6 = vld [vmem:[%s8143_s5 + $0x5f0] ss:$28 sps:$4 sm:$0xff]   ;;  %v6029_v9 = vld [vmem:[%s8143_s5 + $0x620] ss:$28 sps:$4 sm:$0xff]  }
 0x47b   :  { %v7592_v19 = vpack.c.bf16 %v2802_v14, %v2802_v14  ;;  %v7610_v25 = vpack.c.bf16 %v2804_v15, %v2804_v15  ;;  %v6031_v7 = vld [vmem:[%s8143_s5 + $0x624] ss:$28 sps:$4 sm:$0xff]   ;;  %v6034_v8 = vld [vmem:[%s8143_s5 + $0x62c] ss:$28 sps:$4 sm:$0xff]   ;;  %v6037_v11 = vld [vmem:[%s8143_s5 + $0x65c] ss:$28 sps:$4 sm:$0xff]  }
 0x47c   :  { %v6032_v10 = vld [vmem:[%s8143_s5 + $0x628] ss:$28 sps:$4 sm:$0xff]   ;;  %v6035_v14 = vld [vmem:[%s8143_s5 + $0x658] ss:$28 sps:$4 sm:$0xff]   ;;  %v6038_v15 = vld [vmem:[%s8143_s5 + $0x660] ss:$28 sps:$4 sm:$0xff]  }
 0x47d   :  { %4289 = vmatprep.mubr.bf16.mxu1 %v7592_v19  ;;  %4371 = vmatprep.mubr.bf16.mxu0 %v7592_v19  ;;  %v6040_v13 = vld [vmem:[%s8143_s5 + $0x664] ss:$28 sps:$4 sm:$0xff]  }
 0x47e   :  { %4290 = vmatmul.mubr.bf16.vlgmr.msra.gmra.mrb[12].mxu1 %v7600_v22  ;;  %4372 = vmatmul.mubr.bf16.vlgmr.msra.gmra.mrb[12].mxu0 %v7600_v22 }
 0x47f   :  { %4299 = vmatpush1.bf16.msra.mxu1 %v5957_v20  ;;  %4381 = vmatpush1.bf16.msra.mxu0 %v5960_v21  ;;  %v2390_v20 = vrot.slane %v7582_v60, %v7144_v3  ;;  %v6043_v21 = vld [vmem:[%s8143_s5 + $0x694] ss:$28 sps:$4 sm:$0xff]  }
 0x480   :  { %4330 = vmatprep.mubr.bf16.mxu1 %v7610_v25  ;;  %4412 = vmatprep.mubr.bf16.mxu0 %v7610_v25  ;;  %v6044_v60 = vld [vmem:[%s8143_s5 + $0x698] ss:$28 sps:$4 sm:$0xff]  }
 0x481   :  { %4300 = vmatprep.subr.bf16.mxu1 %v5965_v23  ;;  %4382 = vmatprep.subr.bf16.mxu0 %v5968_v24  ;;  %v6046_v23 = vld [vmem:[%s8143_s5 + $0x69c] ss:$28 sps:$4 sm:$0xff]   ;;  %v6041_v24 = vld [vmem:[%s8143_s5 + $0x690] ss:$28 sps:$4 sm:$0xff]  }
 0x483   :  { %4301 = vmatpush1.bf16.msra.mxu1 %v5963_v26  ;;  %4383 = vmatpush1.bf16.msra.mxu0 %v5966_v27  ;;  %v2795_v26 = vadd.f32 %v7590_v1, %v2390_v20  ;;  %v6049_v27 = vld [vmem:[%s8143_s5 + $0x6cc] ss:$28 sps:$4 sm:$0xff]   ;;  %v6111_v20 = vld [vmem:[%s8143_s5 + $0x600] ss:$28 sps:$4 sm:$0xff]  }
 0x484   :  { %4302 = vmatprep.subr.bf16.mxu1 %v5971_v28  ;;  %4384 = vmatprep.subr.bf16.mxu0 %v5974_v29  ;;  %v6052_v28 = vld [vmem:[%s8143_s5 + $0x6d4] ss:$28 sps:$4 sm:$0xff]   ;;  %v6047_v29 = vld [vmem:[%s8143_s5 + $0x6c8] ss:$28 sps:$4 sm:$0xff]  }
 0x485   :  { %v6050_v1 = vld [vmem:[%s8143_s5 + $0x6d0] ss:$28 sps:$4 sm:$0xff]  }
 0x487   :  { %4303 = vmatpush1.bf16.msra.mxu1 %v5969_v30  ;;  %4385 = vmatpush1.bf16.msra.mxu0 %v5972_v31  ;;  %v2803_v30 = vmax.f32 %v2795_v26, 0.0  ;;  %v6055_v31 = vld [vmem:[%s8143_s5 + $0x14] ss:$28 sps:$4 sm:$0xff]  }
 0x488   :  { %4304 = vmatprep.subr.bf16.mxu1 %v5977_v32  ;;  %4386 = vmatprep.subr.bf16.mxu0 %v5980_v33  ;;  %v6056_v32 = vld [vmem:[%s8143_s5 + $0x1d8] ss:$28 sps:$4 sm:$0xff]   ;;  %v6053_v33 = vld [vmem:[%s8143_s5 + $0x10] ss:$28 sps:$4 sm:$0xff]  }
 0x489   :  { %v6113_v26 = vld [vmem:[%s8143_s5 + $0x2b0] ss:$28 sps:$4 sm:$0xff]  }
 0x48b   :  { %4305 = vmatpush1.bf16.msra.mxu1 %v5975_v34  ;;  %4387 = vmatpush1.bf16.msra.mxu0 %v5978_v35  ;;  %v7802_v34 = vpack.c.bf16 %v2803_v30, %v2803_v30  ;;  %v6057_v35 = vld [vmem:[%s8143_s5 + $0x18] ss:$28 sps:$4 sm:$0xff]   ;;  %v6122_v30 = vld [vmem:[%s8143_s5 + $0x4b0] ss:$28 sps:$4 sm:$0xff]  }
 0x48c   :  { %4306 = vmatprep.subr.bf16.mxu1 %v5983_v36  ;;  %4388 = vmatprep.subr.bf16.mxu0 %v5986_v37  ;;  %v6060_v36 = vld [vmem:[%s8143_s5 + $0x4c] ss:$28 sps:$4 sm:$0xff]  }
 0x48d   :  { %v6061_v37 = vld [vmem:[%s8143_s5 + $0x210] ss:$28 sps:$4 sm:$0xff]  }
 0x48f   :  { %4307 = vmatpush1.bf16.msra.mxu1 %v5981_v38  ;;  %4389 = vmatpush1.bf16.msra.mxu0 %v5984_v39  ;;  %v6058_v38 = vld [vmem:[%s8143_s5 + $0x48] ss:$28 sps:$4 sm:$0xff]   ;;  %v6062_v39 = vld [vmem:[%s8143_s5 + $0x50] ss:$28 sps:$4 sm:$0xff]  }
 0x490   :  { %4308 = vmatprep.subr.bf16.mxu1 %v5989_v40  ;;  %4390 = vmatprep.subr.bf16.mxu0 %v5992_v41  ;;  %v6065_v40 = vld [vmem:[%s8143_s5 + $0x84] ss:$28 sps:$4 sm:$0xff]  }
 0x491   :  { %v6066_v41 = vld [vmem:[%s8143_s5 + $0x248] ss:$28 sps:$4 sm:$0xff]  }
 0x493   :  { %4309 = vmatpush1.bf16.msra.mxu1 %v5987_v42  ;;  %4391 = vmatpush1.bf16.msra.mxu0 %v5990_v43  ;;  %v6063_v42 = vld [vmem:[%s8143_s5 + $0x80] ss:$28 sps:$4 sm:$0xff]  }
 0x494   :  { %4310 = vmatprep.subr.bf16.mxu1 %v5995_v44  ;;  %4392 = vmatprep.subr.bf16.mxu0 %v5998_v45  ;;  %v6070_v43 = vld [vmem:[%s8143_s5 + $0xbc] ss:$28 sps:$4 sm:$0xff]  }
 0x495   :  { %v6071_v44 = vld [vmem:[%s8143_s5 + $0x280] ss:$28 sps:$4 sm:$0xff]   ;;  %v6068_v45 = vld [vmem:[%s8143_s5 + $0xb8] ss:$28 sps:$4 sm:$0xff]  }
 0x497   :  { %4311 = vmatpush1.bf16.msra.mxu1 %v5993_v46  ;;  %4393 = vmatpush1.bf16.msra.mxu0 %v5996_v47  ;;  %v6072_v46 = vld [vmem:[%s8143_s5 + $0xc0] ss:$28 sps:$4 sm:$0xff]   ;;  %v6075_v47 = vld [vmem:[%s8143_s5 + $0xf4] ss:$28 sps:$4 sm:$0xff]  }
 0x498   :  { %4312 = vmatprep.subr.bf16.mxu1 %v6001_v48  ;;  %4394 = vmatprep.subr.bf16.mxu0 %v6004_v49  ;;  %v6076_v48 = vld [vmem:[%s8143_s5 + $0x2b8] ss:$28 sps:$4 sm:$0xff]   ;;  %v6073_v49 = vld [vmem:[%s8143_s5 + $0xf0] ss:$28 sps:$4 sm:$0xff]  }
 0x49b   :  { %4313 = vmatpush1.bf16.msra.mxu1 %v5999_v50  ;;  %4395 = vmatpush1.bf16.msra.mxu0 %v6002_v51  ;;  %v6077_v50 = vld [vmem:[%s8143_s5 + $0xf8] ss:$28 sps:$4 sm:$0xff]   ;;  %v6080_v51 = vld [vmem:[%s8143_s5 + $0x12c] ss:$28 sps:$4 sm:$0xff]  }
 0x49c   :  { %4314 = vmatprep.subr.bf16.mxu1 %v6007_v52  ;;  %4396 = vmatprep.subr.bf16.mxu0 %v6010_v53  ;;  %v6081_v52 = vld [vmem:[%s8143_s5 + $0x2f0] ss:$28 sps:$4 sm:$0xff]   ;;  %v6078_v53 = vld [vmem:[%s8143_s5 + $0x128] ss:$28 sps:$4 sm:$0xff]  }
 0x49f   :  { %4315 = vmatpush1.bf16.msra.mxu1 %v6005_v54  ;;  %4397 = vmatpush1.bf16.msra.mxu0 %v6008_v55  ;;  %v6082_v54 = vld [vmem:[%s8143_s5 + $0x130] ss:$28 sps:$4 sm:$0xff]   ;;  %v6085_v55 = vld [vmem:[%s8143_s5 + $0x164] ss:$28 sps:$4 sm:$0xff]  }
 0x4a0   :  { %4316 = vmatprep.subr.bf16.mxu1 %v6013_v56  ;;  %4398 = vmatprep.subr.bf16.mxu0 %v6016_v57  ;;  %v6086_v56 = vld [vmem:[%s8143_s5 + $0x328] ss:$28 sps:$4 sm:$0xff]   ;;  %v6083_v57 = vld [vmem:[%s8143_s5 + $0x160] ss:$28 sps:$4 sm:$0xff]  }
 0x4a3   :  { %4317 = vmatpush1.bf16.msra.mxu1 %v6011_v58  ;;  %4399 = vmatpush1.bf16.msra.mxu0 %v6014_v59  ;;  %v6087_v58 = vld [vmem:[%s8143_s5 + $0x168] ss:$28 sps:$4 sm:$0xff]   ;;  %v6090_v59 = vld [vmem:[%s8143_s5 + $0x19c] ss:$28 sps:$4 sm:$0xff]  }
 0x4a4   :  { %4318 = vmatprep.subr.bf16.mxu1 %v6019_v61  ;;  %4400 = vmatprep.subr.bf16.mxu0 %v6022_v62  ;;  %v6091_v61 = vld [vmem:[%s8143_s5 + $0x360] ss:$28 sps:$4 sm:$0xff]   ;;  %v6088_v62 = vld [vmem:[%s8143_s5 + $0x198] ss:$28 sps:$4 sm:$0xff]  }
 0x4a7   :  { %4319 = vmatpush1.bf16.msra.mxu1 %v6017_v63  ;;  %4401 = vmatpush1.bf16.msra.mxu0 %v6020_v0  ;;  %v6092_v63 = vld [vmem:[%s8143_s5 + $0x1a0] ss:$28 sps:$4 sm:$0xff]   ;;  %v6095_v0 = vld [vmem:[%s8143_s5 + $0x1d4] ss:$28 sps:$4 sm:$0xff]  }
 0x4a8   :  { %4320 = vmatprep.subr.bf16.mxu1 %v6025_v2  ;;  %4402 = vmatprep.subr.bf16.mxu0 %v6028_v4  ;;  %v6096_v2 = vld [vmem:[%s8143_s5 + $0x558] ss:$28 sps:$4 sm:$0xff]   ;;  %v6093_v4 = vld [vmem:[%s8143_s5 + $0x1d0] ss:$28 sps:$4 sm:$0xff]  }
 0x4ab   :  { %4321 = vmatpush1.bf16.msra.mxu1 %v6023_v5  ;;  %4403 = vmatpush1.bf16.msra.mxu0 %v6026_v6  ;;  %v6097_v5 = vld [vmem:[%s8143_s5 + $0x398] ss:$28 sps:$4 sm:$0xff]   ;;  %v6100_v6 = vld [vmem:[%s8143_s5 + $0x20c] ss:$28 sps:$4 sm:$0xff]  }
 0x4ac   :  { %4322 = vmatprep.subr.bf16.mxu1 %v6031_v7  ;;  %4404 = vmatprep.subr.bf16.mxu0 %v6034_v8  ;;  %v6101_v7 = vld [vmem:[%s8143_s5 + $0x590] ss:$28 sps:$4 sm:$0xff]   ;;  %v6098_v8 = vld [vmem:[%s8143_s5 + $0x208] ss:$28 sps:$4 sm:$0xff]  }
 0x4af   :  { %4323 = vmatpush1.bf16.msra.mxu1 %v6029_v9  ;;  %4405 = vmatpush1.bf16.msra.mxu0 %v6032_v10  ;;  %v6102_v9 = vld [vmem:[%s8143_s5 + $0x3d0] ss:$28 sps:$4 sm:$0xff]   ;;  %v6105_v10 = vld [vmem:[%s8143_s5 + $0x244] ss:$28 sps:$4 sm:$0xff]  }
 0x4b0   :  { %4324 = vmatprep.subr.bf16.mxu1 %v6037_v11  ;;  %4406 = vmatprep.subr.bf16.mxu0 %v6040_v13  ;;  %v6106_v11 = vld [vmem:[%s8143_s5 + $0x5c8] ss:$28 sps:$4 sm:$0xff]   ;;  %v6103_v13 = vld [vmem:[%s8143_s5 + $0x240] ss:$28 sps:$4 sm:$0xff]  }
 0x4b3   :  { %4325 = vmatpush1.bf16.msra.mxu1 %v6035_v14  ;;  %4407 = vmatpush1.bf16.msra.mxu0 %v6038_v15  ;;  %v6107_v14 = vld [vmem:[%s8143_s5 + $0x408] ss:$28 sps:$4 sm:$0xff]   ;;  %v6110_v15 = vld [vmem:[%s8143_s5 + $0x27c] ss:$28 sps:$4 sm:$0xff]  }
 0x4b4   :  { %4326 = vmatprep.subr.bf16.mxu1 %v6043_v21  ;;  %4408 = vmatprep.subr.bf16.mxu0 %v6046_v23  ;;  %v6108_v21 = vld [vmem:[%s8143_s5 + $0x278] ss:$28 sps:$4 sm:$0xff]   ;;  %v6112_v23 = vld [vmem:[%s8143_s5 + $0x440] ss:$28 sps:$4 sm:$0xff]  }
 0x4b7   :  { %4327 = vmatpush1.bf16.msra.mxu1 %v6041_v24  ;;  %4409 = vmatpush1.bf16.msra.mxu0 %v6044_v60  ;;  %v6115_v24 = vld [vmem:[%s8143_s5 + $0x2b4] ss:$28 sps:$4 sm:$0xff]  }
 0x4b8   :  { %4328 = vmatprep.subr.bf16.mxu1 %v6049_v27  ;;  %4410 = vmatprep.subr.bf16.mxu0 %v6052_v28  ;;  %v6116_v60 = vld [vmem:[%s8143_s5 + $0x638] ss:$28 sps:$4 sm:$0xff]   ;;  %v6120_v28 = vld [vmem:[%s8143_s5 + $0x2ec] ss:$28 sps:$4 sm:$0xff]  }
 0x4b9   :  { %v6117_v27 = vld [vmem:[%s8143_s5 + $0x478] ss:$28 sps:$4 sm:$0xff]  }
 0x4bb   :  { %4329 = vmatpush1.bf16.msra.mxu1 %v6047_v29  ;;  %4411 = vmatpush1.bf16.msra.mxu0 %v6050_v1  ;;  %v6121_v29 = vld [vmem:[%s8143_s5 + $0x670] ss:$28 sps:$4 sm:$0xff]   ;;  %v6118_v1 = vld [vmem:[%s8143_s5 + $0x2e8] ss:$28 sps:$4 sm:$0xff]  }
 0x4bc   :  { %4421 = vmatprep.subr.bf16.mxu1 %v6055_v31  ;;  %5230 = vmatprep.subr.bf16.mxu0 %v6056_v32  ;;  %v6125_v31 = vld [vmem:[%s8143_s5 + $0x324] ss:$28 sps:$4 sm:$0xff]  }
 0x4bd   :  { %v6126_v32 = vld [vmem:[%s8143_s5 + $0x6a8] ss:$28 sps:$4 sm:$0xff]  }
 0x4be   :  { %4331 = vmatmul.mubr.bf16.vlgmr.msra.gmra.mrb[12].mxu1 %v7802_v34  ;;  %4413 = vmatmul.mubr.bf16.vlgmr.msra.gmra.mrb[12].mxu0 %v7802_v34 }
 0x4bf   :  { %4422 = vmatpush1.bf16.msra.mxu1 %v6053_v33  ;;  %4453 = vmatprep.mubr.bf16.mxu1 %v7592_v19  ;;  %v6123_v33 = vld [vmem:[%s8143_s5 + $0x320] ss:$28 sps:$4 sm:$0xff]  }
 0x4c0   :  { %5231 = vmatpush3.bf16.msra.mxu0 %v6057_v35  ;;  %4535 = vmatprep.mubr.bf16.mxu0 %v7592_v19  ;;  %v6067_v19 = vld [vmem:[%s8143_s5 + $0x88] ss:$28 sps:$4 sm:$0xff]  }
 0x4c1   :  { %4423 = vmatprep.subr.bf16.mxu1 %v6060_v36  ;;  %5232 = vmatprep.subr.bf16.mxu0 %v6061_v37  ;;  %v6127_v35 = vld [vmem:[%s8143_s5 + $0x4e8] ss:$28 sps:$4 sm:$0xff]   ;;  %v6130_v36 = vld [vmem:[%s8143_s5 + $0x35c] ss:$28 sps:$4 sm:$0xff]  }
 0x4c2   :  { %v6131_v37 = vld [vmem:[%s8143_s5 + $0x6e0] ss:$28 sps:$4 sm:$0xff]  }
 0x4c3   :  { %4424 = vmatpush1.bf16.msra.mxu1 %v6058_v38  ;;  %v6128_v38 = vld [vmem:[%s8143_s5 + $0x358] ss:$28 sps:$4 sm:$0xff]  }
 0x4c4   :  { %5233 = vmatpush3.bf16.msra.mxu0 %v6062_v39  ;;  %4425 = vmatprep.subr.bf16.mxu1 %v6065_v40  ;;  %v6132_v39 = vld [vmem:[%s8143_s5 + $0x520] ss:$28 sps:$4 sm:$0xff]   ;;  %v6135_v40 = vld [vmem:[%s8143_s5 + $0x394] ss:$28 sps:$4 sm:$0xff]  }
 0x4c5   :  { %5234 = vmatprep.subr.bf16.mxu0 %v6066_v41  ;;  %v6133_v41 = vld [vmem:[%s8143_s5 + $0x390] ss:$28 sps:$4 sm:$0xff]  }
 0x4c7   :  { %4426 = vmatpush1.bf16.msra.mxu1 %v6063_v42  ;;  %v6138_v42 = vld [vmem:[%s8143_s5 + $0x3cc] ss:$28 sps:$4 sm:$0xff]  }
 0x4c8   :  { %5235 = vmatpush3.bf16.msra.mxu0 %v6067_v19  ;;  %4427 = vmatprep.subr.bf16.mxu1 %v6070_v43  ;;  %v6136_v19 = vld [vmem:[%s8143_s5 + $0x3c8] ss:$28 sps:$4 sm:$0xff]  }
 0x4c9   :  { %5236 = vmatprep.subr.bf16.mxu0 %v6071_v44  ;;  %v6141_v43 = vld [vmem:[%s8143_s5 + $0x404] ss:$28 sps:$4 sm:$0xff]  }
 0x4ca   :  { %v6139_v44 = vld [vmem:[%s8143_s5 + $0x400] ss:$28 sps:$4 sm:$0xff]  }
 0x4cb   :  { %4428 = vmatpush1.bf16.msra.mxu1 %v6068_v45  ;;  %v6147_v45 = vld [vmem:[%s8143_s5 + $0x474] ss:$28 sps:$4 sm:$0xff]  }
 0x4cc   :  { %5237 = vmatpush3.bf16.msra.mxu0 %v6072_v46  ;;  %4429 = vmatprep.subr.bf16.mxu1 %v6075_v47  ;;  %v6145_v46 = vld [vmem:[%s8143_s5 + $0x470] ss:$28 sps:$4 sm:$0xff]  }
 0x4cd   :  { %5238 = vmatprep.subr.bf16.mxu0 %v6076_v48  ;;  %v6150_v47 = vld [vmem:[%s8143_s5 + $0x4ac] ss:$28 sps:$4 sm:$0xff]  }
 0x4ce   :  { %v6148_v48 = vld [vmem:[%s8143_s5 + $0x4a8] ss:$28 sps:$4 sm:$0xff]  }
 0x4cf   :  { %4430 = vmatpush1.bf16.msra.mxu1 %v6073_v49  ;;  %v6153_v49 = vld [vmem:[%s8143_s5 + $0x4e4] ss:$28 sps:$4 sm:$0xff]  }
 0x4d0   :  { %5239 = vmatpush3.bf16.msra.mxu0 %v6077_v50  ;;  %4431 = vmatprep.subr.bf16.mxu1 %v6080_v51  ;;  %v6151_v50 = vld [vmem:[%s8143_s5 + $0x4e0] ss:$28 sps:$4 sm:$0xff]  }
 0x4d1   :  { %5240 = vmatprep.subr.bf16.mxu0 %v6081_v52  ;;  %v6156_v51 = vld [vmem:[%s8143_s5 + $0x51c] ss:$28 sps:$4 sm:$0xff]  }
 0x4d2   :  { %v6154_v52 = vld [vmem:[%s8143_s5 + $0x518] ss:$28 sps:$4 sm:$0xff]  }
 0x4d3   :  { %4432 = vmatpush1.bf16.msra.mxu1 %v6078_v53  ;;  %v6159_v53 = vld [vmem:[%s8143_s5 + $0x554] ss:$28 sps:$4 sm:$0xff]  }
 0x4d4   :  { %5241 = vmatpush3.bf16.msra.mxu0 %v6082_v54  ;;  %4433 = vmatprep.subr.bf16.mxu1 %v6085_v55  ;;  %v6157_v54 = vld [vmem:[%s8143_s5 + $0x550] ss:$28 sps:$4 sm:$0xff]  }
 0x4d5   :  { %5242 = vmatprep.subr.bf16.mxu0 %v6086_v56  ;;  %v6162_v55 = vld [vmem:[%s8143_s5 + $0x58c] ss:$28 sps:$4 sm:$0xff]  }
 0x4d6   :  { %v6160_v56 = vld [vmem:[%s8143_s5 + $0x588] ss:$28 sps:$4 sm:$0xff]  }
 0x4d7   :  { %4434 = vmatpush1.bf16.msra.mxu1 %v6083_v57  ;;  %v6165_v57 = vld [vmem:[%s8143_s5 + $0x5c4] ss:$28 sps:$4 sm:$0xff]  }
 0x4d8   :  { %5243 = vmatpush3.bf16.msra.mxu0 %v6087_v58  ;;  %4435 = vmatprep.subr.bf16.mxu1 %v6090_v59  ;;  %v6163_v58 = vld [vmem:[%s8143_s5 + $0x5c0] ss:$28 sps:$4 sm:$0xff]  }
 0x4d9   :  { %5244 = vmatprep.subr.bf16.mxu0 %v6091_v61  ;;  %v6168_v59 = vld [vmem:[%s8143_s5 + $0x5fc] ss:$28 sps:$4 sm:$0xff]  }
 0x4da   :  { %v6166_v61 = vld [vmem:[%s8143_s5 + $0x5f8] ss:$28 sps:$4 sm:$0xff]  }
 0x4db   :  { %4436 = vmatpush1.bf16.msra.mxu1 %v6088_v62  ;;  %v6171_v62 = vld [vmem:[%s8143_s5 + $0x634] ss:$28 sps:$4 sm:$0xff]  }
 0x4dc   :  { %5245 = vmatpush3.bf16.msra.mxu0 %v6092_v63  ;;  %4437 = vmatprep.subr.bf16.mxu1 %v6095_v0  ;;  %v6169_v63 = vld [vmem:[%s8143_s5 + $0x630] ss:$28 sps:$4 sm:$0xff]  }
 0x4dd   :  { %5252 = vmatprep.subr.bf16.mxu0 %v6096_v2  ;;  %v6174_v0 = vld [vmem:[%s8143_s5 + $0x66c] ss:$28 sps:$4 sm:$0xff]  }
 0x4de   :  { %v6172_v2 = vld [vmem:[%s8143_s5 + $0x668] ss:$28 sps:$4 sm:$0xff]  }
 0x4df   :  { %4536 = vmatmul.mubr.bf16.vlgmr.msra.gmra.mrb[16].mxu0 %v7600_v22  ;;  %4438 = vmatpush1.bf16.msra.mxu1 %v6093_v4  ;;  %v6177_v4 = vld [vmem:[%s8143_s5 + $0x6a4] ss:$28 sps:$4 sm:$0xff]  }
 0x4e0   :  { %5253 = vmatpush3.bf16.msra.mxu0 %v6097_v5  ;;  %4575 = vmatprep.mubr.bf16.mxu0 %v7610_v25  ;;  %v6175_v5 = vld [vmem:[%s8143_s5 + $0x6a0] ss:$28 sps:$4 sm:$0xff]  }
 0x4e1   :  { %4439 = vmatprep.subr.bf16.mxu1 %v6100_v6  ;;  %5254 = vmatprep.subr.bf16.mxu0 %v6101_v7  ;;  %v6180_v6 = vld [vmem:[%s8143_s5 + $0x6dc] ss:$28 sps:$4 sm:$0xff]  }
 0x4e2   :  { %v6178_v7 = vld [vmem:[%s8143_s5 + $0x6d8] ss:$28 sps:$4 sm:$0xff]  }
 0x4e3   :  { %4440 = vmatpush1.bf16.msra.mxu1 %v6098_v8  ;;  %v5004_v8 = vld [vmem:[%s8141_s6 + $0x4] ss:$8 sm:$0xf] }
 0x4e4   :  { %5255 = vmatpush3.bf16.msra.mxu0 %v6102_v9  ;;  %4441 = vmatprep.subr.bf16.mxu1 %v6105_v10  ;;  %v5005_v9 = vld [vmem:[%s8141_s6 + $0x4] ss:$8 sm:$0x70] }
 0x4e5   :  { %5256 = vmatprep.subr.bf16.mxu0 %v6106_v11  ;;  %v8099_v10 = vor.u32 %v5005_v9, %v5004_v8  ;;  %v3088_v8 = vsub.s32 4, %v7029_v12  ;;  %v3092_v9 = vsub.s32 5, %v7029_v12 }
 0x4e7   :  { %4442 = vmatpush1.bf16.msra.mxu1 %v6103_v13  ;;  %v3073_v11 = vrot.slane %v8099_v10, %v7043_v16  ;;  %v3081_v13 = vrot.slane %v8099_v10, %v7144_v3 }
 0x4e8   :  { %5257 = vmatpush3.bf16.msra.mxu0 %v6107_v14  ;;  %4443 = vmatprep.subr.bf16.mxu1 %v6110_v15  ;;  %v3077_v14 = vrot.slane %v8099_v10, %v7046_v17 }
 0x4e9   :  { %5258 = vmatprep.subr.bf16.mxu0 %v6111_v20 }
 0x4eb   :  { %4444 = vmatpush1.bf16.msra.mxu1 %v6108_v21 }
 0x4ec   :  { %5259 = vmatpush3.bf16.msra.mxu0 %v6112_v23  ;;  %4445 = vmatprep.subr.bf16.mxu1 %v6115_v24 }
 0x4ed   :  { %5260 = vmatprep.subr.bf16.mxu0 %v6116_v60 }
 0x4ef   :  { %4446 = vmatpush1.bf16.msra.mxu1 %v6113_v26 }
 0x4f0   :  { %5261 = vmatpush3.bf16.msra.mxu0 %v6117_v27  ;;  %4447 = vmatprep.subr.bf16.mxu1 %v6120_v28 }
 0x4f1   :  { %5262 = vmatprep.subr.bf16.mxu0 %v6121_v29 }
 0x4f3   :  { %4448 = vmatpush1.bf16.msra.mxu1 %v6118_v1 }
 0x4f4   :  { %5263 = vmatpush3.bf16.msra.mxu0 %v6122_v30  ;;  %4449 = vmatprep.subr.bf16.mxu1 %v6125_v31 }
 0x4f5   :  { %5264 = vmatprep.subr.bf16.mxu0 %v6126_v32 }
 0x4f7   :  { %4450 = vmatpush1.bf16.msra.mxu1 %v6123_v33 }
 0x4f8   :  { %5265 = vmatpush3.bf16.msra.mxu0 %v6127_v35  ;;  %4451 = vmatprep.subr.bf16.mxu1 %v6130_v36 }
 0x4f9   :  { %5266 = vmatprep.subr.bf16.mxu0 %v6131_v37 }
 0x4fb   :  { %4452 = vmatpush1.bf16.msra.mxu1 %v6128_v38 }
 0x4fc   :  { %5267 = vmatpush3.bf16.msra.mxu0 %v6132_v39  ;;  %4462 = vmatprep.subr.bf16.mxu1 %v6135_v40 }
 0x4fe   :  { %4454 = vmatmul.mubr.bf16.vlgmr.msra.gmra.mrb[16].mxu1 %v7600_v22  ;;  %v6144_v22 = vld [vmem:[%s8143_s5 + $0x43c] ss:$28 sps:$4 sm:$0xff]  }
 0x4ff   :  { %4576 = vmatmul.mubr.bf16.vlgmr.msra.gmra.mrb[20].mxu0 %v7802_v34  ;;  %4463 = vmatpush1.bf16.msra.mxu1 %v6133_v41 }
 0x500   :  { %4494 = vmatprep.mubr.bf16.mxu1 %v7610_v25  ;;  %4464 = vmatprep.subr.bf16.mxu1 %v6138_v42  ;;  %v6142_v25 = vld [vmem:[%s8143_s5 + $0x438] ss:$28 sps:$4 sm:$0xff]  }
 0x503   :  { %4465 = vmatpush1.bf16.msra.mxu1 %v6136_v19 }
 0x504   :  { %4466 = vmatprep.subr.bf16.mxu1 %v6141_v43 }
 0x507   :  { %4467 = vmatpush1.bf16.msra.mxu1 %v6139_v44 }
 0x508   :  { %4468 = vmatprep.subr.bf16.mxu1 %v6144_v22 }
 0x50b   :  { %4469 = vmatpush1.bf16.msra.mxu1 %v6142_v25 }
 0x50c   :  { %4470 = vmatprep.subr.bf16.mxu1 %v6147_v45 }
 0x50f   :  { %4471 = vmatpush1.bf16.msra.mxu1 %v6145_v46 }
 0x510   :  { %4472 = vmatprep.subr.bf16.mxu1 %v6150_v47 }
 0x513   :  { %4473 = vmatpush1.bf16.msra.mxu1 %v6148_v48 }
 0x514   :  { %4474 = vmatprep.subr.bf16.mxu1 %v6153_v49 }
 0x517   :  { %4475 = vmatpush1.bf16.msra.mxu1 %v6151_v50 }
 0x518   :  { %4476 = vmatprep.subr.bf16.mxu1 %v6156_v51 }
 0x51b   :  { %4477 = vmatpush1.bf16.msra.mxu1 %v6154_v52 }
 0x51c   :  { %4478 = vmatprep.subr.bf16.mxu1 %v6159_v53 }
 0x51f   :  { %4479 = vmatpush1.bf16.msra.mxu1 %v6157_v54  ;;  %v3096_v54 = vsub.s32 6, %v7029_v12 }
 0x520   :  { %4480 = vmatprep.subr.bf16.mxu1 %v6162_v55 }
 0x521   :  { %v3097_v55 = vrot.slane %v8099_v10, %v3096_v54 }
 0x523   :  { %4481 = vmatpush1.bf16.msra.mxu1 %v6160_v56 }
 0x524   :  { %4482 = vmatprep.subr.bf16.mxu1 %v6165_v57 }
 0x527   :  { %4483 = vmatpush1.bf16.msra.mxu1 %v6163_v58 }
 0x528   :  { %4484 = vmatprep.subr.bf16.mxu1 %v6168_v59 }
 0x52b   :  { %4485 = vmatpush1.bf16.msra.mxu1 %v6166_v61 }
 0x52c   :  { %4486 = vmatprep.subr.bf16.mxu1 %v6171_v62 }
 0x52f   :  { %4487 = vmatpush1.bf16.msra.mxu1 %v6169_v63 }
 0x530   :  { %4488 = vmatprep.subr.bf16.mxu1 %v6174_v0 }
 0x533   :  { %4489 = vmatpush1.bf16.msra.mxu1 %v6172_v2 }
 0x534   :  { %4490 = vmatprep.subr.bf16.mxu1 %v6177_v4 }
 0x537   :  { %4491 = vmatpush1.bf16.msra.mxu1 %v6175_v5 }
 0x538   :  { %4492 = vmatprep.subr.bf16.mxu1 %v6180_v6 }
 0x53b   :  { %4493 = vmatpush1.bf16.msra.mxu1 %v6178_v7 }
 0x53e   :  { %4495 = vmatmul.mubr.bf16.vlgmr.msra.gmra.mrb[16].mxu1 %v7802_v34  ;;  %v3085_v34 = vrot.slane %v8099_v10, %v7049_v18 }
 0x591   :  { %v4332_v15 = vpop.f32.mrb[12].mxu1  ;;  %v4414_v20 = vpop.f32.mrb[12].mxu0 }
 0x592   :  { %v5280_v21 = vadd.f32 %v4332_v15, %v3073_v11  ;;  %v5282_v23 = vadd.f32 %v4414_v20, %v3081_v13  ;;  %v4334_v24 = vpop.f32.mrb[13].mxu1  ;;  %v4416_v60 = vpop.f32.mrb[13].mxu0  ;;  %v3089_v11 = vrot.slane %v8099_v10, %v3088_v8  ;;  %v3093_v13 = vrot.slane %v8099_v10, %v3092_v9 }
 0x593   :  { %v5281_v26 = vadd.f32 %v4334_v24, %v3077_v14  ;;  %v5283_v27 = vadd.f32 %v4416_v60, %v3085_v34  ;;  %v4336_v28 = vpop.f32.mrb[14].mxu1  ;;  %v4418_v29 = vpop.f32.mrb[14].mxu0 }
 0x594   :  { %v4583_v16 = vmax.f32 %v5280_v21, -88.0  ;;  %v4585_v1 = vmax.f32 %v5282_v23, -88.0  ;;  %v4337_v30 = vpop.f32.mrb[15].mxu1  ;;  %v4419_v3 = vpop.f32.mrb[15].mxu0 }
 0x595   :  { %v4584_v31 = vmax.f32 %v5281_v26, -88.0  ;;  %v4586_v32 = vmax.f32 %v5283_v27, -88.0 }
 0x596   :  { %v4590_v17 = vsub.f32 0.0, %v4583_v16  ;;  %v4592_v33 = vsub.f32 0.0, %v4585_v1 }
 0x597   :  { %v4591_v35 = vsub.f32 0.0, %v4584_v31  ;;  %v4593_v18 = vsub.f32 0.0, %v4586_v32 }
 0x598   :  { %v4597_v36 = vmul.f32 1.442695, %v4590_v17  ;;  %v4601_v37 = vmul.f32 1.442695, %v4592_v33 }
 0x599   :  { %v4599_v38 = vmul.f32 1.442695, %v4591_v35  ;;  %v4603_v39 = vmul.f32 1.442695, %v4593_v18 }
 0x59a   :  { %6181 = vpow2.f32 %v4597_v36 }
 0x59b   :  { %6183 = vpow2.f32 %v4601_v37 }
 0x59c   :  { %6185 = vpow2.f32 %v4599_v38 }
 0x59d   :  { %6187 = vpow2.f32 %v4603_v39 }
 0x5a4   :  { %v6182_v40 = vpop.eup %6181 }
 0x5a5   :  { %v6184_v41 = vpop.eup %6183  ;;  %v4611_v42 = vadd.f32 1.0, %v6182_v40 }
 0x5a6   :  { %v6186_v19 = vpop.eup %6185  ;;  %v4613_v43 = vadd.f32 1.0, %v6184_v41 }
 0x5a7   :  { %v6188_v44 = vpop.eup %6187  ;;  %6189 = vrcp.f32 %v4611_v42  ;;  %v4612_v22 = vadd.f32 1.0, %v6186_v19 }
 0x5a8   :  { %6191 = vrcp.f32 %v4613_v43  ;;  %v4614_v25 = vadd.f32 1.0, %v6188_v44 }
 0x5a9   :  { %6193 = vrcp.f32 %v4612_v22 }
 0x5aa   :  { %6195 = vrcp.f32 %v4614_v25 }
 0x5b1   :  { %v6190_v45 = vpop.eup %6189 }
 0x5b2   :  { %v6192_v46 = vpop.eup %6191  ;;  %4632 = vst [vmem:[%s8144_s7] sm:$0xff] %v6190_v45  ;;  %v5246_v47 = vpop.f32.mrb[16].mxu0 }
 0x5b3   :  { %v6194_v48 = vpop.eup %6193  ;;  %4634 = vst [vmem:[%s8144_s7 + $0x10] sm:$0xff] %v6192_v46  ;;  %v5247_v49 = vpop.f32.mrb[17].mxu0 }
 0x5b4   :  { %v6196_v50 = vpop.eup %6195  ;;  %4633 = vst [vmem:[%s8144_s7 + $0x8] sm:$0xff] %v6194_v48  ;;  %v5248_v51 = vadd.f32 %v5247_v49, %v5246_v47  ;;  %v5249_v52 = vpop.f32.mrb[18].mxu0 }
 0x5b5   :  { %4635 = vst [vmem:[%s8144_s7 + $0x18] sm:$0xff] %v6196_v50  ;;  %v5250_v53 = vpop.f32.mrb[19].mxu0 }
 0x5b6   :  { %v4538_v58 = vadd.f32 %v5248_v51, %v3097_v55 }
 0x5d2   :  { %v5268_v56 = vpop.f32.mrb[20].mxu0 }
 0x5d3   :  { %v5269_v57 = vpop.f32.mrb[21].mxu0 }
 0x5d4   :  { %v5270_v59 = vadd.f32 %v5269_v57, %v5268_v56  ;;  %v5271_v61 = vpop.f32.mrb[22].mxu0 }
 0x5d5   :  { %v5272_v62 = vpop.f32.mrb[23].mxu0 }
 0x5d6   :  { %v4578_v63 = vadd.f32 %v5270_v59, %v4538_v58 }
 0x5d8   :  { %v4589_v0 = vmax.f32 %v4578_v63, -88.0 }
 0x5da   :  { %v4596_v2 = vsub.f32 0.0, %v4589_v0 }
 0x5dc   :  { %v4609_v4 = vmul.f32 1.442695, %v4596_v2 }
 0x5de   :  { %6197 = vpow2.f32 %v4609_v4 }
 0x5e8   :  { %v6198_v5 = vpop.eup %6197 }
 0x5e9   :  { %v4617_v6 = vadd.f32 1.0, %v6198_v5 }
 0x5eb   :  { %6199 = vrcp.f32 %v4617_v6 }
 0x5f5   :  { %v6200_v7 = vpop.eup %6199 }
 0x5f6   :  { %4638 = vst.msk [vmem:[%s8144_s7 + $0x30] sm:$0xff] %vm1239_vm0, %v6200_v7 }
 0x611   :  { %v4496_v14 = vpop.f32.mrb[16].mxu1 }
 0x612   :  { %v5284_v34 = vadd.f32 %v4496_v14, %v3089_v11  ;;  %v4498_v15 = vpop.f32.mrb[17].mxu1 }
 0x613   :  { %v5285_v20 = vadd.f32 %v4498_v15, %v3093_v13  ;;  %v4500_v21 = vpop.f32.mrb[18].mxu1 }
 0x614   :  { %v4587_v23 = vmax.f32 %v5284_v34, -88.0  ;;  %v4501_v24 = vpop.f32.mrb[19].mxu1 }
 0x615   :  { %v4588_v60 = vmax.f32 %v5285_v20, -88.0 }
 0x616   :  { %v4594_v26 = vsub.f32 0.0, %v4587_v23 }
 0x617   :  { %v4595_v27 = vsub.f32 0.0, %v4588_v60 }
 0x618   :  { %v4605_v28 = vmul.f32 1.442695, %v4594_v26 }
 0x619   :  { %v4607_v29 = vmul.f32 1.442695, %v4595_v27 }
 0x61a   :  { %6201 = vpow2.f32 %v4605_v28 }
 0x61b   :  { %6203 = vpow2.f32 %v4607_v29 }
 0x624   :  { %v6202_v16 = vpop.eup %6201 }
 0x625   :  { %v6204_v12 = vpop.eup %6203  ;;  %v4615_v1 = vadd.f32 1.0, %v6202_v16 }
 0x626   :  { %v4616_v30 = vadd.f32 1.0, %v6204_v12 }
 0x627   :  { %6205 = vrcp.f32 %v4615_v1 }
 0x628   :  { %6207 = vrcp.f32 %v4616_v30 }
 0x631   :  { %v6206_v10 = vpop.eup %6205 }
 0x632   :  { %v6208_v3 = vpop.eup %6207  ;;  %4636 = vst [vmem:[%s8144_s7 + $0x20] sm:$0xff] %v6206_v10 }
 0x633   :  { %4637 = vst [vmem:[%s8144_s7 + $0x28] sm:$0xff] %v6208_v3 }

</bundles_post_ra>
